<compile_context>
chip_gen: v7x
topology: tpu7x:2x2x1
jax: 0.10.0
libtpu: 0.0.40
codegen_flags: <defaults>
</compile_context>

<pallas_src>
import functools

import jax
import jax.numpy as jnp
import numpy as np
from jax import lax
from jax.experimental import pallas as pl
from jax.experimental.pallas import tpu as pltpu


def _mha_kernel(q_ref, k_ref, v_ref, bias_ref,
                wq_ref, wk_ref, wv_ref, wfc_ref, gamma_ref, beta_ref,
                o_ref, *, n_head, d_qkv, compute_dtype):
    """One grid step processes `block_b` batch elements.  All refs are VMEM tiles.

    q_ref:        (block_b, Lq, D) f32          (LayerNorm + residual need f32)
    k_ref, v_ref: (block_b, Lk, D) compute_dtype (cast in wrapper)
    bias_ref:     (block_b, 1, Lk) f32 additive key-pad bias (0 / -1e9)
    wq/wk/wv:     (D, H*dk) compute_dtype, wq pre-scaled by 1/sqrt(dk)
    wfc:          (H*dk, D) compute_dtype
    """
    H, dk = n_head, d_qkv
    block_b, lq, D = q_ref.shape
    lk = k_ref.shape[1]
    HD = H * dk

    # Hoisted once per grid step.
    gamma = gamma_ref[...]                              # (1, D) f32
    beta = beta_ref[...]                                # (1, D) f32
    wq = wq_ref[...]
    wk = wk_ref[...]
    wv = wv_ref[...]
    wfc = wfc_ref[...]
    bias = bias_ref[...]                                # (block_b, 1, Lk) f32

    # ---- LayerNorm + fused Q/K/V projections on whole (block_b*L, D) slabs ----
    x = q_ref[...].reshape(block_b * lq, D)             # f32
    residual = x
    mean = jnp.mean(x, axis=-1, keepdims=True)
    var = jnp.mean(jnp.square(x - mean), axis=-1, keepdims=True)
    xn = (x - mean) * lax.rsqrt(var + 1e-6) * gamma + beta

    # bf16 MXU operands, f32 accumulation; results re-cast to bf16 for the attention core.
    q_c = jnp.dot(xn.astype(compute_dtype), wq,
                  preferred_element_type=jnp.float32).astype(compute_dtype)  # (bb*Lq, HD)
    k_c = jnp.dot(k_ref[...].reshape(block_b * lk, D), wk,
                  preferred_element_type=jnp.float32).astype(compute_dtype)  # (bb*Lk, HD)
    v_c = jnp.dot(v_ref[...].reshape(block_b * lk, D), wv,
                  preferred_element_type=jnp.float32).astype(compute_dtype)  # (bb*Lk, HD)

    # ---- per-batch-element attention core (scores / softmax / attn@V) ----
    # block_b is small & static; switch to lax.fori_loop(..., unroll=True) if it grows.
    ctx_rows = []
    for b in range(block_b):
        # Head-major views: one reshape + lane-layout-aware transpose per tensor.
        q3 = pltpu.einshape('lhd->hld', q_c[b * lq:(b + 1) * lq, :].reshape(lq, H, dk))
        k3 = pltpu.einshape('lhd->hld', k_c[b * lk:(b + 1) * lk, :].reshape(lk, H, dk))
        v3 = pltpu.einshape('lhd->hld', v_c[b * lk:(b + 1) * lk, :].reshape(lk, H, dk))

        # Scores for all heads in one batched matmul (scale folded into wq).
        scores = jnp.einsum('hqd,hkd->hqk', q3, k3,
                            preferred_element_type=jnp.float32)   # (H, Lq, Lk) f32
        scores = scores + bias[b]                                  # additive key-pad bias

        # Softmax in f32; denominator reciprocal on the EUP.
        s_max = jnp.max(scores, axis=-1, keepdims=True)
        p = jnp.exp(scores - s_max)
        attn = p * pl.reciprocal(jnp.sum(p, axis=-1, keepdims=True), approx=True)
        # TODO(synk): attention dropout (p=0.0 in the module) — identity in eval mode.

        ctx = jnp.einsum('hqk,hkd->hqd', attn.astype(compute_dtype), v3,
                         preferred_element_type=jnp.float32)       # (H, Lq, dk)
        # Back to (Lq, H*dk) so the head reduction fuses into the output matmul.
        ctx_rows.append(
            pltpu.einshape('hld->lhd', ctx.astype(compute_dtype)).reshape(lq, HD))

    ctx_all = ctx_rows[0] if block_b == 1 else jnp.concatenate(ctx_rows, axis=0)

    # ---- output projection: single matmul contracting over H*dk (fused head sum) ----
    out = jnp.dot(ctx_all, wfc, preferred_element_type=jnp.float32)   # (bb*Lq, D) f32
    # TODO(synk): output dropout (p=0.3) — identity in eval mode.
    out = out + residual
    o_ref[...] = out.reshape(block_b, lq, D).astype(o_ref.dtype)


def _pick_block_b(batch):
    """Generation-aware grid sizing.

    v7x has 2 TensorCores per chip: keep the grid a multiple of 2 so both are used
    (with dimension_semantics=("parallel",)).  Single-TC chips (v5e/v6e) prefer
    grid=1 because per-grid-step overhead (~0.35us) dominates at these tile sizes.
    """
    try:
        kind = jax.devices()[0].device_kind.lower()
    except Exception:  # pragma: no cover - defensive
        kind = ""
    if "v7" in kind and batch % 2 == 0:
        return batch // 2
    return batch


def multi_head(q, k, v, key_mask, params, *, n_head, d_qkv,
               block_b=None, compute_dtype=jnp.bfloat16):
    """Wrapper: weight prep (scale folding, bf16 casts, additive mask) + pallas_call."""
    B, Lq, D = q.shape
    Lk = k.shape[1]
    H, dk = n_head, d_qkv
    HD = H * dk

    if block_b is None:
        block_b = _pick_block_b(B)
    assert B % block_b == 0, "block_b must divide batch"

    wq, wk, wv, wfc, gamma, beta = params
    temperature = float(dk) ** 0.5
    wq_s = (wq / temperature).astype(compute_dtype)      # fold 1/temperature into W_q
    wk_c = wk.astype(compute_dtype)
    wv_c = wv.astype(compute_dtype)
    wfc_c = wfc.astype(compute_dtype)                    # (HD, D) — head sum fused in matmul
    gamma2 = gamma.reshape(1, D).astype(jnp.float32)
    beta2 = beta.reshape(1, D).astype(jnp.float32)

    # k/v are only ever consumed as bf16 MXU operands -> cast here (halves DMA bytes).
    k_in = k.astype(compute_dtype)
    v_in = v.astype(compute_dtype)

    # Compact additive key-pad bias (B, 1, Lk): 0 keep / -1e9 masked.
    if key_mask is None:
        bias = jnp.zeros((B, 1, Lk), jnp.float32)
    else:
        bias = jnp.where((key_mask != 0).reshape(B, 1, Lk),
                         jnp.float32(0.0), jnp.float32(-1.0e9))

    kernel = functools.partial(_mha_kernel, n_head=H, d_qkv=dk,
                               compute_dtype=compute_dtype)

    def launch(single_buffer_weights):
        def wspec(shape):
            idx = lambda b: (0, 0)
            if single_buffer_weights:
                # Constant index_map -> a second pipeline buffer is pure VMEM waste.
                return pl.BlockSpec(shape, idx, pipeline_mode=pl.Buffered(1))
            return pl.BlockSpec(shape, idx)

        grid_spec = pltpu.PrefetchScalarGridSpec(
            num_scalar_prefetch=0,
            grid=(B // block_b,),
            in_specs=[
                pl.BlockSpec((block_b, Lq, D), lambda b: (b, 0, 0)),   # q (f32)
                pl.BlockSpec((block_b, Lk, D), lambda b: (b, 0, 0)),   # k (bf16)
                pl.BlockSpec((block_b, Lk, D), lambda b: (b, 0, 0)),   # v (bf16)
                pl.BlockSpec((block_b, 1, Lk), lambda b: (b, 0, 0)),   # additive mask bias
                wspec((D, HD)),       # W_q^T / sqrt(dk)
                wspec((D, HD)),       # W_k^T
                wspec((D, HD)),       # W_v^T
                wspec((HD, D)),       # W_fc^T
                wspec((1, D)),        # LN gamma
                wspec((1, D)),        # LN beta
            ],
            out_specs=pl.BlockSpec((block_b, Lq, D), lambda b: (b, 0, 0)),
        )
        return pl.pallas_call(
            kernel,
            out_shape=jax.ShapeDtypeStruct((B, Lq, D), jnp.float32),
            grid_spec=grid_spec,
            compiler_params=pltpu.CompilerParams(
                dimension_semantics=("parallel",),
                vmem_limit_bytes=32 * 1024 * 1024),
        )(q, k_in, v_in, bias, wq_s, wk_c, wv_c, wfc_c, gamma2, beta2)

    try:
        return launch(True)
    except (TypeError, AttributeError, NotImplementedError, pltpu.LoweringException):
        # Only the optional pipeline_mode=pl.Buffered(1) request is allowed to fail;
        # any genuine kernel error re-raises from the default-buffered launch below.
        return launch(False)


def _reference(q, k, v, key_mask, params, *, n_head, d_qkv):
    """Pure-JAX f32 reference mirroring the PyTorch MultiHead module (eval mode)."""
    wq, wk, wv, wfc, gamma, beta = params
    B, Lq, D = q.shape
    Lk = k.shape[1]
    residual = q
    mean = jnp.mean(q, axis=-1, keepdims=True)
    var = jnp.mean((q - mean) ** 2, axis=-1, keepdims=True)
    qn = (q - mean) / jnp.sqrt(var + 1e-6) * gamma + beta
    Q = (qn @ wq).reshape(B, Lq, n_head, d_qkv).transpose(0, 2, 1, 3)
    K = (k @ wk).reshape(B, Lk, n_head, d_qkv).transpose(0, 2, 1, 3)
    V = (v @ wv).reshape(B, Lk, n_head, d_qkv).transpose(0, 2, 1, 3)
    scores = jnp.einsum("bhqd,bhkd->bhqk", Q / (d_qkv ** 0.5), K)
    if key_mask is not None:
        scores = jnp.where(key_mask[:, None, None, :] != 0, scores, -1.0e9)
    attn = jax.nn.softmax(scores, axis=-1)
    ctx = jnp.einsum("bhqk,bhkd->bhqd", attn, V).transpose(0, 2, 1, 3).reshape(B, Lq, -1)
    return ctx @ wfc + residual


if __name__ == "__main__":
    # Small shapes consistent with the module.
    B, L, d_model, n_head, d_qkv = 2, 8, 32, 4, 16
    hd = n_head * d_qkv

    key = jax.random.PRNGKey(0)
    k_q, k_k, k_v, k_wq, k_wk, k_wv, k_fc = jax.random.split(key, 7)

    q = jax.random.normal(k_q, (B, L, d_model), jnp.float32)
    k = jax.random.normal(k_k, (B, L, d_model), jnp.float32)
    v = jax.random.normal(k_v, (B, L, d_model), jnp.float32)

    # Key-pad mask (1 = valid token, 0 = padding), as passed to MultiHead.forward(mask=...).
    key_mask = jnp.array([[1, 1, 1, 0, 0, 0, 0, 0],
                          [1, 1, 1, 1, 1, 1, 0, 0]], jnp.int32)

    # Deterministic synthetic parameters (stored pre-transposed as (in, out)).
    scale = 0.1
    wq_t = scale * jax.random.normal(k_wq, (d_model, hd), jnp.float32)
    wk_t = scale * jax.random.normal(k_wk, (d_model, hd), jnp.float32)
    wv_t = scale * jax.random.normal(k_wv, (d_model, hd), jnp.float32)
    wfc_t = scale * jax.random.normal(k_fc, (hd, d_model), jnp.float32)
    gamma = jnp.ones((d_model,), jnp.float32)    # LayerNorm weight (default init)
    beta = jnp.zeros((d_model,), jnp.float32)    # LayerNorm bias (default init)
    params = (wq_t, wk_t, wv_t, wfc_t, gamma, beta)

    out = multi_head(q, k, v, key_mask, params, n_head=n_head, d_qkv=d_qkv,
                     compute_dtype=jnp.bfloat16)
    out = jax.block_until_ready(out)

    ref = _reference(q, k, v, key_mask, params, n_head=n_head, d_qkv=d_qkv)
    # bf16 MXU operands (f32 accumulation) + EUP approx reciprocal -> relaxed tolerance.
    np.testing.assert_allclose(np.asarray(out), np.asarray(ref), rtol=2e-2, atol=2e-2)

    print("KERNEL_OK")
</pallas_src>

<mosaic_0001>
module attributes {stable_mosaic.version = 11 : i64} {
  func.func @_mha_kernel(%arg0: i32, %arg1: memref<2x8x32xf32, #tpu.memory_space<vmem>>, %arg2: memref<2x8x32xbf16, #tpu.memory_space<vmem>>, %arg3: memref<2x8x32xbf16, #tpu.memory_space<vmem>>, %arg4: memref<2x1x8xf32, #tpu.memory_space<vmem>>, %arg5: memref<32x64xbf16, #tpu.memory_space<vmem>>, %arg6: memref<32x64xbf16, #tpu.memory_space<vmem>>, %arg7: memref<32x64xbf16, #tpu.memory_space<vmem>>, %arg8: memref<64x32xbf16, #tpu.memory_space<vmem>>, %arg9: memref<1x32xf32, #tpu.memory_space<vmem>>, %arg10: memref<1x32xf32, #tpu.memory_space<vmem>>, %arg11: memref<2x8x32xf32, #tpu.memory_space<vmem>>) attributes {dimension_semantics = [#tpu.dimension_semantics<parallel>], iteration_bounds = array<i64: 1>, scalar_prefetch = 0 : i64, scratch_operands = 0 : i64, tpu.core_type = #tpu.core_type<tc>, window_params = [{transform_indices = @transform_0, window_bounds = array<i64: 2, 8, 32>}, {transform_indices = @transform_1, window_bounds = array<i64: 2, 8, 32>}, {transform_indices = @transform_2, window_bounds = array<i64: 2, 8, 32>}, {transform_indices = @transform_3, window_bounds = array<i64: 2, 1, 8>}, {pipeline_mode = #tpu.pipeline_mode<synchronous>, transform_indices = @transform_4, window_bounds = array<i64: 32, 64>}, {pipeline_mode = #tpu.pipeline_mode<synchronous>, transform_indices = @transform_5, window_bounds = array<i64: 32, 64>}, {pipeline_mode = #tpu.pipeline_mode<synchronous>, transform_indices = @transform_6, window_bounds = array<i64: 32, 64>}, {pipeline_mode = #tpu.pipeline_mode<synchronous>, transform_indices = @transform_7, window_bounds = array<i64: 64, 32>}, {pipeline_mode = #tpu.pipeline_mode<synchronous>, transform_indices = @transform_8, window_bounds = array<i64: 1, 32>}, {pipeline_mode = #tpu.pipeline_mode<synchronous>, transform_indices = @transform_9, window_bounds = array<i64: 1, 32>}, {transform_indices = @transform_10, window_bounds = array<i64: 2, 8, 32>}]} {
    %c0 = arith.constant 0 : index
    %c0_0 = arith.constant 0 : index
    %0 = vector.load %arg9[%c0, %c0_0] : memref<1x32xf32, #tpu.memory_space<vmem>>, vector<1x32xf32>
    %c0_1 = arith.constant 0 : index
    %c0_2 = arith.constant 0 : index
    %1 = vector.load %arg10[%c0_1, %c0_2] : memref<1x32xf32, #tpu.memory_space<vmem>>, vector<1x32xf32>
    %c0_3 = arith.constant 0 : index
    %c0_4 = arith.constant 0 : index
    %2 = vector.load %arg5[%c0_3, %c0_4] : memref<32x64xbf16, #tpu.memory_space<vmem>>, vector<32x64xbf16>
    %c0_5 = arith.constant 0 : index
    %c0_6 = arith.constant 0 : index
    %3 = vector.load %arg6[%c0_5, %c0_6] : memref<32x64xbf16, #tpu.memory_space<vmem>>, vector<32x64xbf16>
    %c0_7 = arith.constant 0 : index
    %c0_8 = arith.constant 0 : index
    %4 = vector.load %arg7[%c0_7, %c0_8] : memref<32x64xbf16, #tpu.memory_space<vmem>>, vector<32x64xbf16>
    %c0_9 = arith.constant 0 : index
    %c0_10 = arith.constant 0 : index
    %5 = vector.load %arg8[%c0_9, %c0_10] : memref<64x32xbf16, #tpu.memory_space<vmem>>, vector<64x32xbf16>
    %c0_11 = arith.constant 0 : index
    %c0_12 = arith.constant 0 : index
    %c0_13 = arith.constant 0 : index
    %6 = vector.load %arg4[%c0_11, %c0_12, %c0_13] : memref<2x1x8xf32, #tpu.memory_space<vmem>>, vector<2x1x8xf32>
    %c0_14 = arith.constant 0 : index
    %c0_15 = arith.constant 0 : index
    %c0_16 = arith.constant 0 : index
    %7 = vector.load %arg1[%c0_14, %c0_15, %c0_16] : memref<2x8x32xf32, #tpu.memory_space<vmem>>, vector<2x8x32xf32>
    %8 = vector.shape_cast %7 : vector<2x8x32xf32> to vector<16x32xf32>
    %cst = arith.constant dense<0.000000e+00> : vector<16xf32>
    %9 = vector.multi_reduction <add>, %8, %cst [1] : vector<16x32xf32> to vector<16xf32>
    %10 = vector.shape_cast %9 : vector<16xf32> to vector<16x1xf32>
    %cst_17 = arith.constant 3.200000e+01 : f32
    %11 = vector.broadcast %cst_17 : f32 to vector<16x1xf32>
    %12 = arith.divf %10, %11 : vector<16x1xf32>
    %13 = vector.broadcast %12 : vector<16x1xf32> to vector<16x32xf32>
    %14 = arith.subf %8, %13 : vector<16x32xf32>
    %15 = arith.mulf %14, %14 : vector<16x32xf32>
    %cst_18 = arith.constant dense<0.000000e+00> : vector<16xf32>
    %16 = vector.multi_reduction <add>, %15, %cst_18 [1] : vector<16x32xf32> to vector<16xf32>
    %17 = vector.shape_cast %16 : vector<16xf32> to vector<16x1xf32>
    %cst_19 = arith.constant 3.200000e+01 : f32
    %18 = vector.broadcast %cst_19 : f32 to vector<16x1xf32>
    %19 = arith.divf %17, %18 : vector<16x1xf32>
    %20 = vector.broadcast %12 : vector<16x1xf32> to vector<16x32xf32>
    %21 = arith.subf %8, %20 : vector<16x32xf32>
    %cst_20 = arith.constant 9.99999997E-7 : f32
    %22 = vector.broadcast %cst_20 : f32 to vector<16x1xf32>
    %23 = arith.addf %19, %22 : vector<16x1xf32>
    %24 = math.rsqrt %23 : vector<16x1xf32>
    %25 = vector.broadcast %24 : vector<16x1xf32> to vector<16x32xf32>
    %26 = arith.mulf %21, %25 : vector<16x32xf32>
    %27 = vector.broadcast %0 : vector<1x32xf32> to vector<16x32xf32>
    %28 = arith.mulf %26, %27 : vector<16x32xf32>
    %29 = vector.broadcast %1 : vector<1x32xf32> to vector<16x32xf32>
    %30 = arith.addf %28, %29 : vector<16x32xf32>
    %31 = arith.truncf %30 : vector<16x32xf32> to vector<16x32xbf16>
    %cst_21 = arith.constant dense<0.000000e+00> : vector<16x64xf32>
    %32 = tpu.matmul %31, %2, %cst_21 {dimension_numbers = #tpu.dot_dimension_numbers<[1], [0], [0], [1], [0, 0, 1, 1], [], []>} : vector<16x32xbf16>, vector<32x64xbf16>, vector<16x64xf32> -> vector<16x64xf32>
    %33 = arith.truncf %32 : vector<16x64xf32> to vector<16x64xbf16>
    %c0_22 = arith.constant 0 : index
    %c0_23 = arith.constant 0 : index
    %c0_24 = arith.constant 0 : index
    %34 = vector.load %arg2[%c0_22, %c0_23, %c0_24] : memref<2x8x32xbf16, #tpu.memory_space<vmem>>, vector<2x8x32xbf16>
    %35 = vector.shape_cast %34 : vector<2x8x32xbf16> to vector<16x32xbf16>
    %cst_25 = arith.constant dense<0.000000e+00> : vector<16x64xf32>
    %36 = tpu.matmul %35, %3, %cst_25 {dimension_numbers = #tpu.dot_dimension_numbers<[1], [0], [0], [1], [0, 0, 1, 1], [], []>} : vector<16x32xbf16>, vector<32x64xbf16>, vector<16x64xf32> -> vector<16x64xf32>
    %37 = arith.truncf %36 : vector<16x64xf32> to vector<16x64xbf16>
    %c0_26 = arith.constant 0 : index
    %c0_27 = arith.constant 0 : index
    %c0_28 = arith.constant 0 : index
    %38 = vector.load %arg3[%c0_26, %c0_27, %c0_28] : memref<2x8x32xbf16, #tpu.memory_space<vmem>>, vector<2x8x32xbf16>
    %39 = vector.shape_cast %38 : vector<2x8x32xbf16> to vector<16x32xbf16>
    %cst_29 = arith.constant dense<0.000000e+00> : vector<16x64xf32>
    %40 = tpu.matmul %39, %4, %cst_29 {dimension_numbers = #tpu.dot_dimension_numbers<[1], [0], [0], [1], [0, 0, 1, 1], [], []>} : vector<16x32xbf16>, vector<32x64xbf16>, vector<16x64xf32> -> vector<16x64xf32>
    %41 = arith.truncf %40 : vector<16x64xf32> to vector<16x64xbf16>
    %42 = vector.extract_strided_slice %33 {offsets = [0, 0], sizes = [8, 64], strides = [1, 1]} : vector<16x64xbf16> to vector<8x64xbf16>
    %43 = vector.shape_cast %42 : vector<8x64xbf16> to vector<8x4x16xbf16>
    %44 = tpu.transpose %43, [1, 0, 2] : vector<8x4x16xbf16> -> vector<4x8x16xbf16>
    %45 = vector.extract_strided_slice %37 {offsets = [0, 0], sizes = [8, 64], strides = [1, 1]} : vector<16x64xbf16> to vector<8x64xbf16>
    %46 = vector.shape_cast %45 : vector<8x64xbf16> to vector<8x4x16xbf16>
    %47 = tpu.transpose %46, [1, 0, 2] : vector<8x4x16xbf16> -> vector<4x8x16xbf16>
    %48 = vector.extract_strided_slice %41 {offsets = [0, 0], sizes = [8, 64], strides = [1, 1]} : vector<16x64xbf16> to vector<8x64xbf16>
    %49 = vector.shape_cast %48 : vector<8x64xbf16> to vector<8x4x16xbf16>
    %50 = tpu.transpose %49, [1, 0, 2] : vector<8x4x16xbf16> -> vector<4x8x16xbf16>
    "tpu.trace_start"() <{level = 10 : i32, message = "hqd,hkd->hqk"}> : () -> ()
    %cst_30 = arith.constant dense<0.000000e+00> : vector<4x8x8xf32>
    %51 = tpu.matmul %44, %47, %cst_30 {dimension_numbers = #tpu.dot_dimension_numbers<[2], [2], [1], [1], [0, 0, 0, 1, 1, 1], [0], [0]>} : vector<4x8x16xbf16>, vector<4x8x16xbf16>, vector<4x8x8xf32> -> vector<4x8x8xf32>
    "tpu.trace_stop"() : () -> ()
    %52 = vector.extract_strided_slice %6 {offsets = [0, 0, 0], sizes = [1, 1, 8], strides = [1, 1, 1]} : vector<2x1x8xf32> to vector<1x1x8xf32>
    %53 = vector.shape_cast %52 : vector<1x1x8xf32> to vector<1x8xf32>
    %54 = vector.shape_cast %53 : vector<1x8xf32> to vector<1x1x8xf32>
    %55 = vector.broadcast %54 : vector<1x1x8xf32> to vector<4x8x8xf32>
    %56 = arith.addf %51, %55 : vector<4x8x8xf32>
    %cst_31 = arith.constant dense<0xFF800000> : vector<4x8xf32>
    %57 = vector.multi_reduction <maximumf>, %56, %cst_31 [2] : vector<4x8x8xf32> to vector<4x8xf32>
    %58 = vector.shape_cast %57 : vector<4x8xf32> to vector<4x8x1xf32>
    %59 = vector.broadcast %58 : vector<4x8x1xf32> to vector<4x8x8xf32>
    %60 = arith.subf %56, %59 : vector<4x8x8xf32>
    %61 = math.exp %60 : vector<4x8x8xf32>
    %cst_32 = arith.constant dense<0.000000e+00> : vector<4x8xf32>
    %62 = vector.multi_reduction <add>, %61, %cst_32 [2] : vector<4x8x8xf32> to vector<4x8xf32>
    %63 = vector.shape_cast %62 : vector<4x8xf32> to vector<4x8x1xf32>
    %64 = tpu.reciprocal %63 {approx = true} : vector<4x8x1xf32> -> vector<4x8x1xf32>
    %65 = vector.broadcast %64 : vector<4x8x1xf32> to vector<4x8x8xf32>
    %66 = arith.mulf %61, %65 : vector<4x8x8xf32>
    %67 = arith.truncf %66 : vector<4x8x8xf32> to vector<4x8x8xbf16>
    "tpu.trace_start"() <{level = 10 : i32, message = "hqk,hkd->hqd"}> : () -> ()
    %cst_33 = arith.constant dense<0.000000e+00> : vector<4x8x16xf32>
    %68 = tpu.matmul %67, %50, %cst_33 {dimension_numbers = #tpu.dot_dimension_numbers<[2], [1], [1], [2], [0, 0, 0, 1, 1, 2], [0], [0]>} : vector<4x8x8xbf16>, vector<4x8x16xbf16>, vector<4x8x16xf32> -> vector<4x8x16xf32>
    "tpu.trace_stop"() : () -> ()
    %69 = arith.truncf %68 : vector<4x8x16xf32> to vector<4x8x16xbf16>
    %70 = tpu.transpose %69, [1, 0, 2] : vector<4x8x16xbf16> -> vector<8x4x16xbf16>
    %71 = vector.shape_cast %70 : vector<8x4x16xbf16> to vector<8x64xbf16>
    %72 = vector.extract_strided_slice %33 {offsets = [8, 0], sizes = [8, 64], strides = [1, 1]} : vector<16x64xbf16> to vector<8x64xbf16>
    %73 = vector.shape_cast %72 : vector<8x64xbf16> to vector<8x4x16xbf16>
    %74 = tpu.transpose %73, [1, 0, 2] : vector<8x4x16xbf16> -> vector<4x8x16xbf16>
    %75 = vector.extract_strided_slice %37 {offsets = [8, 0], sizes = [8, 64], strides = [1, 1]} : vector<16x64xbf16> to vector<8x64xbf16>
    %76 = vector.shape_cast %75 : vector<8x64xbf16> to vector<8x4x16xbf16>
    %77 = tpu.transpose %76, [1, 0, 2] : vector<8x4x16xbf16> -> vector<4x8x16xbf16>
    %78 = vector.extract_strided_slice %41 {offsets = [8, 0], sizes = [8, 64], strides = [1, 1]} : vector<16x64xbf16> to vector<8x64xbf16>
    %79 = vector.shape_cast %78 : vector<8x64xbf16> to vector<8x4x16xbf16>
    %80 = tpu.transpose %79, [1, 0, 2] : vector<8x4x16xbf16> -> vector<4x8x16xbf16>
    "tpu.trace_start"() <{level = 10 : i32, message = "hqd,hkd->hqk"}> : () -> ()
    %cst_34 = arith.constant dense<0.000000e+00> : vector<4x8x8xf32>
    %81 = tpu.matmul %74, %77, %cst_34 {dimension_numbers = #tpu.dot_dimension_numbers<[2], [2], [1], [1], [0, 0, 0, 1, 1, 1], [0], [0]>} : vector<4x8x16xbf16>, vector<4x8x16xbf16>, vector<4x8x8xf32> -> vector<4x8x8xf32>
    "tpu.trace_stop"() : () -> ()
    %82 = vector.extract_strided_slice %6 {offsets = [1, 0, 0], sizes = [1, 1, 8], strides = [1, 1, 1]} : vector<2x1x8xf32> to vector<1x1x8xf32>
    %83 = vector.shape_cast %82 : vector<1x1x8xf32> to vector<1x8xf32>
    %84 = vector.shape_cast %83 : vector<1x8xf32> to vector<1x1x8xf32>
    %85 = vector.broadcast %84 : vector<1x1x8xf32> to vector<4x8x8xf32>
    %86 = arith.addf %81, %85 : vector<4x8x8xf32>
    %cst_35 = arith.constant dense<0xFF800000> : vector<4x8xf32>
    %87 = vector.multi_reduction <maximumf>, %86, %cst_35 [2] : vector<4x8x8xf32> to vector<4x8xf32>
    %88 = vector.shape_cast %87 : vector<4x8xf32> to vector<4x8x1xf32>
    %89 = vector.broadcast %88 : vector<4x8x1xf32> to vector<4x8x8xf32>
    %90 = arith.subf %86, %89 : vector<4x8x8xf32>
    %91 = math.exp %90 : vector<4x8x8xf32>
    %cst_36 = arith.constant dense<0.000000e+00> : vector<4x8xf32>
    %92 = vector.multi_reduction <add>, %91, %cst_36 [2] : vector<4x8x8xf32> to vector<4x8xf32>
    %93 = vector.shape_cast %92 : vector<4x8xf32> to vector<4x8x1xf32>
    %94 = tpu.reciprocal %93 {approx = true} : vector<4x8x1xf32> -> vector<4x8x1xf32>
    %95 = vector.broadcast %94 : vector<4x8x1xf32> to vector<4x8x8xf32>
    %96 = arith.mulf %91, %95 : vector<4x8x8xf32>
    %97 = arith.truncf %96 : vector<4x8x8xf32> to vector<4x8x8xbf16>
    "tpu.trace_start"() <{level = 10 : i32, message = "hqk,hkd->hqd"}> : () -> ()
    %cst_37 = arith.constant dense<0.000000e+00> : vector<4x8x16xf32>
    %98 = tpu.matmul %97, %80, %cst_37 {dimension_numbers = #tpu.dot_dimension_numbers<[2], [1], [1], [2], [0, 0, 0, 1, 1, 2], [0], [0]>} : vector<4x8x8xbf16>, vector<4x8x16xbf16>, vector<4x8x16xf32> -> vector<4x8x16xf32>
    "tpu.trace_stop"() : () -> ()
    %99 = arith.truncf %98 : vector<4x8x16xf32> to vector<4x8x16xbf16>
    %100 = tpu.transpose %99, [1, 0, 2] : vector<4x8x16xbf16> -> vector<8x4x16xbf16>
    %101 = vector.shape_cast %100 : vector<8x4x16xbf16> to vector<8x64xbf16>
    %102 = tpu.concatenate %71, %101 in 0 : vector<8x64xbf16>, vector<8x64xbf16> -> vector<16x64xbf16>
    %cst_38 = arith.constant dense<0.000000e+00> : vector<16x32xf32>
    %103 = tpu.matmul %102, %5, %cst_38 {dimension_numbers = #tpu.dot_dimension_numbers<[1], [0], [0], [1], [0, 0, 1, 1], [], []>} : vector<16x64xbf16>, vector<64x32xbf16>, vector<16x32xf32> -> vector<16x32xf32>
    %104 = arith.addf %103, %8 : vector<16x32xf32>
    %105 = vector.shape_cast %104 : vector<16x32xf32> to vector<2x8x32xf32>
    %c0_39 = arith.constant 0 : index
    %c0_40 = arith.constant 0 : index
    %c0_41 = arith.constant 0 : index
    %106 = vector.load %arg11[%c0_39, %c0_40, %c0_41] : memref<2x8x32xf32, #tpu.memory_space<vmem>>, vector<2x8x32xf32>
    tpu.vector_store %arg11[%c0_39, %c0_40, %c0_41], %105 {strides = array<i32>} : memref<2x8x32xf32, #tpu.memory_space<vmem>>, vector<2x8x32xf32>,
    return
  }
  func.func @transform_0(%arg0: i32) -> (i32, i32, i32) {
    %c0_i32 = arith.constant 0 : i32
    %c0_i32_0 = arith.constant 0 : i32
    %c0_i32_1 = arith.constant 0 : i32
    return %arg0, %c0_i32, %c0_i32_0 : i32, i32, i32
  }
  func.func @transform_1(%arg0: i32) -> (i32, i32, i32) {
    %c0_i32 = arith.constant 0 : i32
    %c0_i32_0 = arith.constant 0 : i32
    %c0_i32_1 = arith.constant 0 : i32
    return %arg0, %c0_i32, %c0_i32_0 : i32, i32, i32
  }
  func.func @transform_2(%arg0: i32) -> (i32, i32, i32) {
    %c0_i32 = arith.constant 0 : i32
    %c0_i32_0 = arith.constant 0 : i32
    %c0_i32_1 = arith.constant 0 : i32
    return %arg0, %c0_i32, %c0_i32_0 : i32, i32, i32
  }
  func.func @transform_3(%arg0: i32) -> (i32, i32, i32) {
    %c0_i32 = arith.constant 0 : i32
    %c0_i32_0 = arith.constant 0 : i32
    %c0_i32_1 = arith.constant 0 : i32
    return %arg0, %c0_i32, %c0_i32_0 : i32, i32, i32
  }
  func.func @transform_4(%arg0: i32) -> (i32, i32) {
    %c0_i32 = arith.constant 0 : i32
    %c0_i32_0 = arith.constant 0 : i32
    %c0_i32_1 = arith.constant 0 : i32
    return %c0_i32, %c0_i32_0 : i32, i32
  }
  func.func @transform_5(%arg0: i32) -> (i32, i32) {
    %c0_i32 = arith.constant 0 : i32
    %c0_i32_0 = arith.constant 0 : i32
    %c0_i32_1 = arith.constant 0 : i32
    return %c0_i32, %c0_i32_0 : i32, i32
  }
  func.func @transform_6(%arg0: i32) -> (i32, i32) {
    %c0_i32 = arith.constant 0 : i32
    %c0_i32_0 = arith.constant 0 : i32
    %c0_i32_1 = arith.constant 0 : i32
    return %c0_i32, %c0_i32_0 : i32, i32
  }
  func.func @transform_7(%arg0: i32) -> (i32, i32) {
    %c0_i32 = arith.constant 0 : i32
    %c0_i32_0 = arith.constant 0 : i32
    %c0_i32_1 = arith.constant 0 : i32
    return %c0_i32, %c0_i32_0 : i32, i32
  }
  func.func @transform_8(%arg0: i32) -> (i32, i32) {
    %c0_i32 = arith.constant 0 : i32
    %c0_i32_0 = arith.constant 0 : i32
    %c0_i32_1 = arith.constant 0 : i32
    return %c0_i32, %c0_i32_0 : i32, i32
  }
  func.func @transform_9(%arg0: i32) -> (i32, i32) {
    %c0_i32 = arith.constant 0 : i32
    %c0_i32_0 = arith.constant 0 : i32
    %c0_i32_1 = arith.constant 0 : i32
    return %c0_i32, %c0_i32_0 : i32, i32
  }
  func.func @transform_10(%arg0: i32) -> (i32, i32, i32) {
    %c0_i32 = arith.constant 0 : i32
    %c0_i32_0 = arith.constant 0 : i32
    %c0_i32_1 = arith.constant 0 : i32
    return %arg0, %c0_i32, %c0_i32_0 : i32, i32, i32
  }
}

</mosaic_0001>

<bundles_post_ra>
// kernel: tpu_custom_call.1
= control target key start
LH: loop header
LB: loop body
LE: loop exit
PB: predicated region body
PF: predicated region fallthrough
CT: control target
= control target key end

     0   :  { %15 = vsyncpa [#allocation3], 0  ;;  %s3685_s0 = inlined_call_operand.vmem [shape: f32[2,8,32], index: 0, kind: input, shape index: {}]   ;;  %s3686_s1 = inlined_call_operand.hbm [shape: bf16[2,8,32], index: 1, kind: input, shape index: {}]   ;;  %s3687_s2 = inlined_call_operand.hbm [shape: bf16[2,8,32], index: 2, kind: input, shape index: {}]   ;;  %s3688_s3 = inlined_call_operand.vmem [shape: f32[2,1,8], index: 3, kind: input, shape index: {}]   ;;  %s3689_s4 = inlined_call_operand.vmem [shape: bf16[32,64], index: 4, kind: input, shape index: {}]   ;;  %s3690_s5 = inlined_call_operand.vmem [shape: bf16[32,64], index: 5, kind: input, shape index: {}]   ;;  %s3691_s6 = inlined_call_operand.hbm [shape: bf16[32,64], index: 6, kind: input, shape index: {}]   ;;  %s3692_s7 = inlined_call_operand.vmem [shape: bf16[64,32], index: 7, kind: input, shape index: {}]   ;;  %s3693_s8 = inlined_call_operand.vmem [shape: f32[1,32], index: 8, kind: input, shape index: {}]   ;;  %s3694_s9 = inlined_call_operand.vmem [shape: f32[1,32], index: 9, kind: input, shape index: {}]   ;;  %s3695_s10 = inlined_call_operand.hbm [shape: f32[2,8,32], index: 10, kind: output, shape index: {}]  }
   0x1   :  { %16 = vsyncpa [#allocation6], 0 }
   0x2   :  { %17 = vsyncpa [#allocation4], 0  ;;  %s3003_s13 = smov [#allocation5]   ;;  %s3004_s15 = smov [#allocation2]  }
   0x3   :  { %s37_s14 = sshll.u32 %s3003_s13, 4  ;;  %s25_s16 = sshll.u32 %s3004_s15, 4  ;;  %s38_s14 = int_to_ptr.vmem [resolvable:$true] %s37_s14  ;;  %s3077_s16 = int_to_ptr.vmem [resolvable:$true] %s25_s16 }
   0x4   :  { %s2909_s19 = scalar_lea.hbm %s3687_s2, 128 }
   0x5   :  { %p2910_p0 = scmp.ne.s32.totalorder %s3687_s2, %s2909_s19  ;;  %p2913_p1 = scmp.lt.u32.totalorder %s2909_s19, %s3687_s2 }
   0x7   :  { %p2915_p2 = pnand %p2913_p1, %p2910_p0 }
   0x9   :  { %2918 = shalt.err (!%p2915_p2)
}
   0xa   :  { %s2919_s24 = scalar_lea.vmem %s38_s14, 128  ;;  %p2924_p4 = scmp.lt.s32.totalorder %s38_s14, %s38_s14 }
   0xb   :  { %p2920_p3 = scmp.ne.s32.totalorder %s38_s14, %s2919_s24  ;;  %p2925_p5 = scmp.lt.s32.totalorder %s2919_s24, %s2919_s24 }
   0xd   :  { %p2926_p6 = por %p2925_p5, %p2924_p4 }
   0xf   :  { %p2927_p7 = pnand %p2926_p6, %p2920_p3 }
  0x11   :  { %2930 = shalt.err (!%p2927_p7)
}
  0x12   :  { %s3005_s25 = smov 64   ;;  %s3006_s26 = smov 4  }
  0x13   :  { %43 = dma.hbm_to_vmem [thread:$0]  %s3687_s2, 128, %s38_s14, [#allocation6], %s3005_s25, %s3005_s25, %s3006_s26  }
  0x14   :  { %s2931_s11 = scalar_lea.hbm %s3686_s1, 128 }
  0x15   :  { %p2932_p8 = scmp.ne.s32.totalorder %s3686_s1, %s2931_s11  ;;  %p2935_p9 = scmp.lt.u32.totalorder %s2931_s11, %s3686_s1 }
  0x17   :  { %p2937_p10 = pnand %p2935_p9, %p2932_p8 }
  0x19   :  { %2940 = shalt.err (!%p2937_p10)
}
  0x1a   :  { %s2941_s18 = scalar_lea.vmem %s3077_s16, 128  ;;  %p2946_p12 = scmp.lt.s32.totalorder %s3077_s16, %s3077_s16 }
  0x1b   :  { %p2942_p11 = scmp.ne.s32.totalorder %s3077_s16, %s2941_s18  ;;  %p2947_p13 = scmp.lt.s32.totalorder %s2941_s18, %s2941_s18 }
  0x1d   :  { %p2948_p0 = por %p2947_p13, %p2946_p12 }
  0x1f   :  { %p2949_p1 = pnand %p2948_p0, %p2942_p11 }
  0x21   :  { %2952 = shalt.err (!%p2949_p1)
}
  0x22   :  { %31 = dma.hbm_to_vmem [thread:$0]  %s3686_s1, 128, %s3077_s16, [#allocation3], %s3005_s25, %s3005_s25, %s3006_s26  }
  0x23   :  { %s3007_s19 = smov [#allocation7]   ;;  %s2953_s23 = scalar_lea.hbm %s3691_s6, 256 }
  0x24   :  { %s55_s20 = sshll.u32 %s3007_s19, 4  ;;  %p2954_p2 = scmp.ne.s32.totalorder %s3691_s6, %s2953_s23  ;;  %s56_s20 = int_to_ptr.vmem [resolvable:$true] %s55_s20 }
  0x25   :  { %p2957_p3 = scmp.lt.u32.totalorder %s2953_s23, %s3691_s6 }
  0x27   :  { %p2959_p4 = pnand %p2957_p3, %p2954_p2 }
  0x29   :  { %2962 = shalt.err (!%p2959_p4)
}
  0x2a   :  { %s2963_s30 = scalar_lea.vmem %s56_s20, 256  ;;  %p2968_p6 = scmp.lt.s32.totalorder %s56_s20, %s56_s20 }
  0x2b   :  { %p2964_p5 = scmp.ne.s32.totalorder %s56_s20, %s2963_s30  ;;  %p2969_p7 = scmp.lt.s32.totalorder %s2963_s30, %s2963_s30 }
  0x2d   :  { %p2970_p8 = por %p2969_p7, %p2968_p6 }
  0x2f   :  { %p2971_p9 = pnand %p2970_p8, %p2964_p5 }
  0x31   :  { %2974 = shalt.err (!%p2971_p9)
}
  0x32   :  { %61 = dma.hbm_to_vmem [thread:$0]  %s3691_s6, 256, %s56_s20, [#allocation6], %s3005_s25, %s3005_s25, %s3006_s26  }
  0x33   :  { %2997 = dma.done.wait [#allocation3], 128  }
  0x34   :  { %2998 = vsyncadd [#allocation3], 4294967168 }
  0x35   :  { %2999 = dma.done.wait [#allocation6], 384  }
  0x36   :  { %3000 = vsyncadd [#allocation6], 4294966912  ;;  %vm104_vm0 = vcmask 261120   ;;  %v102_v0 = vld [vmem:[%s3685_s0] sm:$0xff]  ;;  %v103_v1 = vld [vmem:[%s3685_s0 + $0x8] sm:$0xff]  ;;  %v3008_v5 = vmov 0.0   ;;  %v344_v44 = vlaneseq }
  0x37   :  { %v105_v2 = vsel %vm104_vm0, %v102_v0, 0.0  ;;  %v108_v3 = vsel %vm104_vm0, %v103_v1, 0.0  ;;  %v2859_v4 = vld [vmem:[%s3690_s5] sm:$0xff]   ;;  %2716 = vmatprep.subr.bf16.mxu1 %v3008_v5  ;;  %vm3009_vm1 = vmmov 0   ;;  %v2860_v6 = vld [vmem:[%s3690_s5 + $0x8] sm:$0xff]   ;;  %2708 = vmatprep.subr.bf16.mxu0 %v3008_v5  ;;  %s3010_s19 = smov 96  }
  0x38   :  { %106 = vadd.xlane.f32.xlu0 %v105_v2  ;;  %2720 = vmatprep.mubr.msk.bf16.mxu1 %vm3009_vm1, %v3008_v5  ;;  %v2861_v7 = vld [vmem:[#allocation2] sm:$0xff]   ;;  %v2863_v19 = vld [vmem:[%s3689_s4 + $0x8] sm:$0xff]   ;;  %s3011_s20 = smov 112   ;;  %s3012_s21 = smov 80   ;;  %v3013_v42 = vmov 1983009808  }
  0x39   :  { %2717 = vmatpush3.bf16.msra.mxu1 %v2859_v4  ;;  %2712 = vmatprep.mubr.msk.bf16.mxu0 %vm3009_vm1, %v3008_v5  ;;  %v2862_v18 = vld [vmem:[%s3689_s4] sm:$0xff]   ;;  %v342_v43 = vunpack.c.l.s4 %v3013_v42  ;;  %v345_v46 = vshrl.u32 %v344_v44, 7  ;;  %v3014_v56 = vmov 1934713408   ;;  %vm844_vm2 = vcmask 130048   ;;  %s3017_s6 = smov 32  }
  0x3a   :  { %2718 = vmatprep.subr.bf16.mxu1 %v3008_v5  ;;  %2709 = vmatpush3.bf16.msra.mxu0 %v2862_v18  ;;  %v2626_v33 = vld [vmem:[%s3693_s8] ss:$0 sm:$0xff]  ;;  %v359_v57 = vunpack.c.l.s4 %v3014_v56  ;;  %vm1029_vm3 = vcmask 64512   ;;  %vm1081_vm4 = vcmask 1043456   ;;  %s3018_s25 = smov 48   ;;  %vm1436_vm5 = vcmask 392192  }
  0x3b   :  { %2710 = vmatprep.subr.bf16.mxu0 %v3008_v5  ;;  %v2627_v37 = vld [vmem:[%s3694_s9] ss:$0 sm:$0xff]  ;;  %v343_v45 = vunpack.c.0.s8 %v342_v43  ;;  %vm2562_vm6 = vcmask 523264  }
  0x3c   :  { %109 = vadd.xlane.f32.xlu0 %v108_v3  ;;  %v360_v63 = vunpack.c.0.s8 %v359_v57 }
  0x3d   :  { %2719 = vmatpush3.bf16.msra.mxu1 %v2860_v6  ;;  %v3176_v48 = vsub.s32 %v343_v45, %v345_v46 }
  0x3e   :  { %2732 = vmatprep.subr.bf16.mxu1 %v3008_v5  ;;  %2711 = vmatpush3.bf16.msra.mxu0 %v2863_v19 }
  0x3f   :  { %2724 = vmatprep.subr.bf16.mxu0 %v3008_v5 }
  0x40   :  { %2721 = vmatmul.mubr.msk.bf16.vlgmr.msra.gmra.mrb[0].mxu1 %vm104_vm0, %v2861_v7 }
  0x41   :  { %2734 = vmatprep.mubr.msk.bf16.mxu1 %vm3009_vm1, %v3008_v5 }
  0xc5   :  { %v107_v8 = vpop.xlane.xlu0 %106 }
  0xc6   :  { %v112_v9 = vmul.f32 0.03125, %v107_v8 }
  0xc8   :  { %v114_v10 = vsub.f32 %v102_v0, %v112_v9 }
  0xc9   :  { %v110_v11 = vpop.xlane.xlu0 %109 }
  0xca   :  { %v113_v12 = vmul.f32 0.03125, %v110_v11  ;;  %v116_v13 = vmul.f32 %v114_v10, %v114_v10 }
  0xcc   :  { %v115_v14 = vsub.f32 %v103_v1, %v113_v12  ;;  %v118_v15 = vsel %vm104_vm0, %v116_v13, 0.0  ;;  %v3182_v1 = vsub.s32 %v360_v63, %v345_v46 }
  0xcd   :  { %119 = vadd.xlane.f32.xlu1 %v118_v15 }
  0xce   :  { %v117_v16 = vmul.f32 %v115_v14, %v115_v14 }
  0xd0   :  { %v121_v17 = vsel %vm104_vm0, %v117_v16, 0.0 }
  0xd1   :  { %122 = vadd.xlane.f32.xlu1 %v121_v17 }
 0x113   :  { %v262_v20 = vpop.f32.mrb[0].mxu1 }
 0x114   :  { %v2722_v21 = vpop.f32.mrb[1].mxu1 }
 0x115   :  { %v265_v22 = vpop.f32.mrb[2].mxu1 }
 0x116   :  { %v269_v23 = vpack.c.bf16 %v265_v22, %v262_v20  ;;  %v2723_v24 = vpop.f32.mrb[3].mxu1 }
 0x118   :  { %505 = vrot.lane.b32.xlu1 %v269_v23, %s3010_s19  ;;  %503 = vrot.lane.b32.xlu0 %v269_v23, %s3011_s20  ;;  %v1605_v47 = vrot.slane %v269_v23, 4  ;;  %v515_v6 = vrot.slane %v269_v23, %v3176_v48 }
 0x11a   :  { %v1616_v52 = vrot.slane %v1605_v47, %v3176_v48 }
 0x11c   :  { %507 = vrot.lane.b32.xlu1 %v269_v23, %s3012_s21  ;;  %v3015_v23 = vmov 0  }
 0x15a   :  { %v120_v25 = vpop.xlane.xlu1 %119 }
 0x15b   :  { %v124_v26 = vmul.f32 0.03125, %v120_v25 }
 0x15d   :  { %v126_v27 = vadd.f32 1e-06, %v124_v26 }
 0x15e   :  { %v123_v28 = vpop.xlane.xlu1 %122 }
 0x15f   :  { %2871 = vrsqrt.f32 %v126_v27  ;;  %v125_v29 = vmul.f32 0.03125, %v123_v28 }
 0x161   :  { %v127_v30 = vadd.f32 1e-06, %v125_v29 }
 0x163   :  { %2873 = vrsqrt.f32 %v127_v30 }
 0x169   :  { %v2872_v31 = vpop.eup %2871 }
 0x16a   :  { %v130_v32 = vmul.f32 %v2872_v31, %v114_v10 }
 0x16c   :  { %v138_v36 = vmul.f32 %v2626_v33, %v130_v32 }
 0x16d   :  { %v2874_v34 = vpop.eup %2873 }
 0x16e   :  { %v131_v35 = vmul.f32 %v2874_v34, %v115_v14  ;;  %v146_v39 = vadd.f32 %v2627_v37, %v138_v36 }
 0x170   :  { %v139_v38 = vmul.f32 %v2626_v33, %v131_v35 }
 0x172   :  { %v147_v40 = vadd.f32 %v2627_v37, %v139_v38 }
 0x174   :  { %v148_v41 = vpack.c.bf16 %v147_v40, %v146_v39 }
 0x176   :  { %2713 = vmatmul.mubr.msk.bf16.vlgmr.msra.gmra.mrb[0].mxu0 %vm104_vm0, %v148_v41 }
 0x177   :  { %2728 = vmatprep.mubr.msk.bf16.mxu0 %vm3009_vm1, %v3008_v5 }
 0x18a   :  { %v506_v49 = vpop.permute.xlu1 %505  ;;  %v504_v50 = vpop.permute.xlu0 %503 }
 0x18b   :  { %v1607_v51 = vrot.slane %v506_v49, 4  ;;  %v1606_v54 = vrot.slane %v504_v50, 4  ;;  %v523_v7 = vrot.slane %v506_v49, %v3176_v48  ;;  %v549_v9 = vrot.slane %v504_v50, %v3176_v48  ;;  %v2864_v49 = vld [vmem:[#allocation7] sm:$0xff]  }
 0x18c   :  { %2725 = vmatpush3.bf16.msra.mxu0 %v2864_v49 }
 0x18d   :  { %v1624_v53 = vrot.slane %v1607_v51, %v3176_v48  ;;  %v1650_v61 = vrot.slane %v1606_v54, %v3176_v48  ;;  %v524_v14 = vcombine.low %v515_v6, %v523_v7  ;;  %v525_v15 = vcombine.high %v515_v6, %v523_v7  ;;  %2726 = vmatprep.subr.bf16.mxu0 %v3008_v5 }
 0x18e   :  { %v508_v55 = vpop.permute.xlu1 %507 }
 0x18f   :  { %v1625_v58 = vcombine.low %v1616_v52, %v1624_v53  ;;  %v1626_v59 = vcombine.high %v1616_v52, %v1624_v53  ;;  %v1608_v60 = vrot.slane %v508_v55, 4  ;;  %v557_v8 = vrot.slane %v508_v55, %v3176_v48 }
 0x190   :  { %v532_v19 = vrot.slane %v524_v14, %v3182_v1  ;;  %v539_v20 = vrot.slane %v525_v15, %v3182_v1 }
 0x191   :  { %v1658_v62 = vrot.slane %v1608_v60, %v3176_v48  ;;  %v3185_v3 = vrot.slane %v1625_v58, %v3182_v1  ;;  %v3195_v10 = vrot.slane %v1626_v59, %v3182_v1  ;;  %v558_v16 = vcombine.low %v549_v9, %v557_v8  ;;  %v2865_v58 = vld [vmem:[#allocation7 + $0x8] sm:$0xff]  }
 0x192   :  { %v559_v17 = vcombine.high %v549_v9, %v557_v8  ;;  %v540_v24 = vcombine.high %v532_v19, %v3015_v23  ;;  %v541_v25 = vcombine.high %v539_v20, %v3015_v23  ;;  %v580_v28 = vshrl.u32 %v532_v19, 16  ;;  %2727 = vmatpush3.bf16.msra.mxu0 %v2865_v58 }
 0x193   :  { %v1659_v0 = vcombine.low %v1650_v61, %v1658_v62  ;;  %v1660_v2 = vcombine.high %v1650_v61, %v1658_v62  ;;  %v566_v21 = vrot.slane %v558_v16, %v3182_v1  ;;  %v596_v29 = vshrl.u32 %v539_v20, 16  ;;  %2738 = vmatprep.subr.bf16.mxu0 %v3008_v5 }
 0x194   :  { %v573_v22 = vrot.slane %v559_v17, %v3182_v1  ;;  %v588_v32 = vshrl.u32 %v540_v24, 16  ;;  %v604_v33 = vshrl.u32 %v541_v25, 16  ;;  %v1641_v44 = vcombine.high %v3185_v3, %v3015_v23 }
 0x195   :  { %v3188_v4 = vrot.slane %v1659_v0, %v3182_v1  ;;  %v3198_v11 = vrot.slane %v1660_v2, %v3182_v1  ;;  %v574_v26 = vcombine.high %v566_v21, %v3015_v23  ;;  %v581_v30 = vshrl.u32 %v566_v21, 16 }
 0x196   :  { %v575_v27 = vcombine.high %v573_v22, %v3015_v23  ;;  %v597_v31 = vshrl.u32 %v573_v22, 16  ;;  %v578_v36 = vpack.i.b16 %v566_v21, %v532_v19  ;;  %v594_v37 = vpack.i.b16 %v573_v22, %v539_v20 }
 0x197   :  { %v1679_v12 = vpack.i.b16 %v3188_v4, %v3185_v3  ;;  %v1695_v13 = vpack.i.b16 %v3198_v11, %v3195_v10  ;;  %v589_v34 = vshrl.u32 %v574_v26, 16  ;;  %v582_v38 = vpack.i.b16 %v581_v30, %v580_v28 }
 0x198   :  { %v605_v35 = vshrl.u32 %v575_v27, 16  ;;  %v586_v39 = vpack.i.b16 %v574_v26, %v540_v24  ;;  %v598_v40 = vpack.i.b16 %v597_v31, %v596_v29  ;;  %v602_v41 = vpack.i.b16 %v575_v27, %v541_v25 }
 0x199   :  { %v3204_v18 = vcombine.low %v1679_v12, %v1695_v13  ;;  %v590_v42 = vpack.i.b16 %v589_v34, %v588_v32  ;;  %v608_v45 = vcombine.low %v578_v36, %v594_v37  ;;  %v1642_v50 = vcombine.high %v3195_v10, %v3015_v23  ;;  %v2866_v13 = vld [vmem:[#allocation5] sm:$0xff]  }
 0x19a   :  { %v606_v43 = vpack.i.b16 %v605_v35, %v604_v33  ;;  %v616_v46 = vcombine.low %v586_v39, %v602_v41  ;;  %v633_v47 = vcombine.low %v582_v38, %v598_v40  ;;  %v1675_v51 = vcombine.high %v3188_v4, %v3015_v23  ;;  %2729 = vmatmul.mubr.msk.bf16.vlgmr.msra.gmra.mrb[4].mxu0 %vm104_vm0, %v2866_v13 }
 0x19b   :  { %v1676_v52 = vcombine.high %v3198_v11, %v3015_v23  ;;  %v1681_v54 = vshrl.u32 %v3185_v3, 16  ;;  %v1689_v55 = vshrl.u32 %v1641_v44, 16  ;;  %v1697_v56 = vshrl.u32 %v3195_v10, 16  ;;  %2740 = vmatprep.mubr.msk.bf16.mxu0 %vm3009_vm1, %v3008_v5 }
 0x19c   :  { %v641_v53 = vcombine.low %v590_v42, %v606_v43  ;;  %v1682_v57 = vshrl.u32 %v3188_v4, 16  ;;  %v615_v59 = vrot.slane %v608_v45, %v3176_v48  ;;  %v623_v60 = vrot.slane %v616_v46, %v3176_v48 }
 0x19d   :  { %v640_v61 = vrot.slane %v633_v47, %v3176_v48  ;;  %v1705_v63 = vshrl.u32 %v1642_v50, 16  ;;  %v1690_v0 = vshrl.u32 %v1675_v51, 16  ;;  %v1698_v2 = vshrl.u32 %v3198_v11, 16 }
 0x19e   :  { %v648_v62 = vrot.slane %v641_v53, %v3176_v48  ;;  %v1706_v3 = vshrl.u32 %v1676_v52, 16  ;;  %v624_v6 = vcombine.low %v615_v59, %v623_v60  ;;  %v1687_v4 = vpack.i.b16 %v1675_v51, %v1641_v44 }
 0x19f   :  { %v1683_v8 = vpack.i.b16 %v1682_v57, %v1681_v54  ;;  %v1703_v9 = vpack.i.b16 %v1676_v52, %v1642_v50  ;;  %v1691_v14 = vpack.i.b16 %v1690_v0, %v1689_v55  ;;  %v1699_v15 = vpack.i.b16 %v1698_v2, %v1697_v56 }
 0x1a0   :  { %v649_v7 = vcombine.low %v640_v61, %v648_v62  ;;  %v631_v10 = vrot.slane %v624_v6, %v3182_v1  ;;  %v1707_v16 = vpack.i.b16 %v1706_v3, %v1705_v63  ;;  %v1716_v27 = vrot.slane %v3204_v18, %v3176_v48 }
 0x1a1   :  { %v1717_v22 = vcombine.low %v1687_v4, %v1703_v9  ;;  %v1734_v24 = vcombine.low %v1683_v8, %v1699_v15 }
 0x1a2   :  { %v656_v12 = vrot.slane %v649_v7, %v3182_v1  ;;  %v661_v11 = vshrl.u32 %v631_v10, 16  ;;  %v1742_v25 = vcombine.low %v1691_v14, %v1707_v16  ;;  %v3247_v31 = vcombine.high %v631_v10, %v3015_v23 }
 0x1a3   :  { %v1724_v28 = vrot.slane %v1717_v22, %v3176_v48  ;;  %v1741_v29 = vrot.slane %v1734_v24, %v3176_v48 }
 0x1a4   :  { %v660_v17 = vpack.i.b16 %v656_v12, %v631_v10  ;;  %v662_v19 = vshrl.u32 %v656_v12, 16  ;;  %v1749_v30 = vrot.slane %v1742_v25, %v3176_v48  ;;  %v3250_v32 = vcombine.high %v656_v12, %v3015_v23 }
 0x1a5   :  { %v1725_v33 = vcombine.low %v1716_v27, %v1724_v28  ;;  %v667_v18 = vshrl.u32 %v3247_v31, 16 }
 0x1a6   :  { %v849_v20 = vsel %vm844_vm2, %v660_v17, 0  ;;  %v663_v21 = vpack.i.b16 %v662_v19, %v661_v11  ;;  %v1750_v34 = vcombine.low %v1741_v29, %v1749_v30  ;;  %v666_v35 = vpack.i.b16 %v3250_v32, %v3247_v31 }
 0x1a7   :  { %2733 = vmatpush3.bf16.xpose.msra.mxu1 %v849_v20  ;;  %v668_v36 = vshrl.u32 %v3250_v32, 16  ;;  %v3257_v37 = vrot.slane %v1725_v33, %v3182_v1 }
 0x1a8   :  { %v895_v26 = vsel %vm844_vm2, %v663_v21, 0  ;;  %2744 = vmatprep.subr.bf16.mxu1 %v3008_v5  ;;  %v3260_v38 = vrot.slane %v1750_v34, %v3182_v1 }
 0x1a9   :  { %2739 = vmatpush3.bf16.xpose.msra.mxu0 %v895_v26  ;;  %v3262_v39 = vpack.i.b16 %v668_v36, %v667_v18  ;;  %v1762_v40 = vshrl.u32 %v3257_v37, 16  ;;  %v3270_v43 = vcombine.high %v3257_v37, %v3015_v23 }
 0x1aa   :  { %2750 = vmatprep.subr.bf16.mxu0 %v3008_v5  ;;  %v1761_v41 = vpack.i.b16 %v3260_v38, %v3257_v37  ;;  %v1763_v42 = vshrl.u32 %v3260_v38, 16  ;;  %v3274_v44 = vcombine.high %v3260_v38, %v3015_v23 }
 0x1ab   :  { %v1768_v47 = vshrl.u32 %v3270_v43, 16  ;;  %v987_v31 = vsel %vm844_vm2, %v3262_v39, 0 }
 0x1ac   :  { %v3276_v45 = vpack.i.b16 %v1763_v42, %v1762_v40  ;;  %v1767_v46 = vpack.i.b16 %v3274_v44, %v3270_v43  ;;  %v1769_v49 = vshrl.u32 %v3274_v44, 16 }
 0x1ae   :  { %v3282_v50 = vpack.i.b16 %v1769_v49, %v1768_v47  ;;  %v2039_v37 = vsel %vm844_vm2, %v1767_v46, 0 }
 0x1b0   :  { %v2085_v38 = vsel %vm844_vm2, %v3282_v50, 0 }
 0x249   :  { %v198_v51 = vpop.f32.mrb[0].mxu0 }
 0x24a   :  { %v2714_v52 = vpop.f32.mrb[1].mxu0 }
 0x24b   :  { %v201_v53 = vpop.f32.mrb[2].mxu0 }
 0x24c   :  { %v205_v54 = vpack.c.bf16 %v201_v53, %v198_v51  ;;  %v2715_v55 = vpop.f32.mrb[3].mxu0 }
 0x24e   :  { %337 = vrot.lane.b32.xlu0 %v205_v54, %s3010_s19  ;;  %335 = vrot.lane.b32.xlu1 %v205_v54, %s3011_s20  ;;  %v1439_v61 = vrot.slane %v205_v54, 4  ;;  %v347_v0 = vrot.slane %v205_v54, %v3176_v48 }
 0x250   :  { %v1450_v4 = vrot.slane %v1439_v61, %v3176_v48 }
 0x252   :  { %339 = vrot.lane.b32.xlu1 %v205_v54, %s3012_s21 }
 0x26d   :  { %v326_v56 = vpop.f32.mrb[4].mxu0 }
 0x26e   :  { %v2730_v57 = vpop.f32.mrb[5].mxu0 }
 0x26f   :  { %v329_v58 = vpop.f32.mrb[6].mxu0 }
 0x270   :  { %v3287_v59 = vpack.c.bf16 %v329_v58, %v326_v56  ;;  %v2731_v60 = vpop.f32.mrb[7].mxu0 }
 0x2c0   :  { %v338_v62 = vpop.permute.xlu0 %337  ;;  %v336_v63 = vpop.permute.xlu1 %335 }
 0x2c1   :  { %v355_v2 = vrot.slane %v338_v62, %v3176_v48  ;;  %v1441_v3 = vrot.slane %v338_v62, 4  ;;  %v1440_v9 = vrot.slane %v336_v63, 4  ;;  %v381_v16 = vrot.slane %v336_v63, %v3176_v48 }
 0x2c3   :  { %v356_v6 = vcombine.low %v347_v0, %v355_v2  ;;  %v357_v7 = vcombine.high %v347_v0, %v355_v2  ;;  %v1458_v8 = vrot.slane %v1441_v3, %v3176_v48  ;;  %v1484_v27 = vrot.slane %v1440_v9, %v3176_v48 }
 0x2c4   :  { %v340_v10 = vpop.permute.xlu1 %339 }
 0x2c5   :  { %v364_v12 = vrot.slane %v356_v6, %v3182_v1  ;;  %v371_v13 = vrot.slane %v357_v7, %v3182_v1  ;;  %v1459_v14 = vcombine.low %v1450_v4, %v1458_v8  ;;  %v1460_v15 = vcombine.high %v1450_v4, %v1458_v8 }
 0x2c6   :  { %v389_v17 = vrot.slane %v340_v10, %v3176_v48  ;;  %v1442_v11 = vrot.slane %v340_v10, 4 }
 0x2c7   :  { %v372_v19 = vcombine.high %v364_v12, %v3015_v23  ;;  %v373_v20 = vcombine.high %v371_v13, %v3015_v23  ;;  %v1467_v21 = vrot.slane %v1459_v14, %v3182_v1  ;;  %v1474_v22 = vrot.slane %v1460_v15, %v3182_v1 }
 0x2c8   :  { %v390_v24 = vcombine.low %v381_v16, %v389_v17  ;;  %v391_v25 = vcombine.high %v381_v16, %v389_v17  ;;  %v412_v26 = vshrl.u32 %v364_v12, 16  ;;  %v1492_v28 = vrot.slane %v1442_v11, %v3176_v48 }
 0x2c9   :  { %v420_v29 = vshrl.u32 %v372_v19, 16  ;;  %v428_v30 = vshrl.u32 %v371_v13, 16  ;;  %v436_v33 = vshrl.u32 %v373_v20, 16  ;;  %v1475_v34 = vcombine.high %v1467_v21, %v3015_v23 }
 0x2ca   :  { %v398_v18 = vrot.slane %v390_v24, %v3182_v1  ;;  %v405_v36 = vrot.slane %v391_v25, %v3182_v1  ;;  %v1493_v40 = vcombine.low %v1484_v27, %v1492_v28  ;;  %v1494_v42 = vcombine.high %v1484_v27, %v1492_v28 }
 0x2cb   :  { %v1476_v47 = vcombine.high %v1474_v22, %v3015_v23  ;;  %v1515_v49 = vshrl.u32 %v1467_v21, 16  ;;  %v1523_v51 = vshrl.u32 %v1475_v34, 16  ;;  %v1531_v52 = vshrl.u32 %v1474_v22, 16 }
 0x2cc   :  { %v406_v53 = vcombine.high %v398_v18, %v3015_v23  ;;  %v407_v54 = vcombine.high %v405_v36, %v3015_v23  ;;  %v410_v55 = vpack.i.b16 %v398_v18, %v364_v12  ;;  %v413_v56 = vshrl.u32 %v398_v18, 16 }
 0x2cd   :  { %v426_v57 = vpack.i.b16 %v405_v36, %v371_v13  ;;  %v429_v58 = vshrl.u32 %v405_v36, 16  ;;  %v1501_v60 = vrot.slane %v1493_v40, %v3182_v1  ;;  %v1508_v61 = vrot.slane %v1494_v42, %v3182_v1 }
 0x2ce   :  { %v414_v62 = vpack.i.b16 %v413_v56, %v412_v26  ;;  %v418_v63 = vpack.i.b16 %v406_v53, %v372_v19  ;;  %v421_v0 = vshrl.u32 %v406_v53, 16  ;;  %v434_v2 = vpack.i.b16 %v407_v54, %v373_v20 }
 0x2cf   :  { %v430_v3 = vpack.i.b16 %v429_v58, %v428_v30  ;;  %v437_v6 = vshrl.u32 %v407_v54, 16  ;;  %v440_v7 = vcombine.low %v410_v55, %v426_v57  ;;  %v1509_v4 = vcombine.high %v1501_v60, %v3015_v23 }
 0x2d0   :  { %v422_v8 = vpack.i.b16 %v421_v0, %v420_v29  ;;  %v448_v9 = vcombine.low %v418_v63, %v434_v2  ;;  %v1510_v10 = vcombine.high %v1508_v61, %v3015_v23  ;;  %v1513_v12 = vpack.i.b16 %v1501_v60, %v1467_v21 }
 0x2d1   :  { %v438_v13 = vpack.i.b16 %v437_v6, %v436_v33  ;;  %v447_v14 = vrot.slane %v440_v7, %v3176_v48  ;;  %v465_v15 = vcombine.low %v414_v62, %v430_v3  ;;  %v1516_v16 = vshrl.u32 %v1501_v60, 16 }
 0x2d2   :  { %v455_v17 = vrot.slane %v448_v9, %v3176_v48  ;;  %v1521_v11 = vpack.i.b16 %v1509_v4, %v1475_v34  ;;  %v1524_v19 = vshrl.u32 %v1509_v4, 16  ;;  %v1529_v20 = vpack.i.b16 %v1508_v61, %v1474_v22 }
 0x2d3   :  { %v1539_v24 = vshrl.u32 %v1476_v47, 16  ;;  %v473_v25 = vcombine.low %v422_v8, %v438_v13  ;;  %v1517_v26 = vpack.i.b16 %v1516_v16, %v1515_v49  ;;  %v1532_v27 = vshrl.u32 %v1508_v61, 16 }
 0x2d4   :  { %v456_v28 = vcombine.low %v447_v14, %v455_v17  ;;  %v1525_v29 = vpack.i.b16 %v1524_v19, %v1523_v51  ;;  %v1537_v30 = vpack.i.b16 %v1510_v10, %v1476_v47  ;;  %v1540_v18 = vshrl.u32 %v1510_v10, 16  ;;  %v2639_v19 = vld [vmem:[%s3688_s3] ss:$0 sm:$0xff] }
 0x2d5   :  { %v472_v21 = vrot.slane %v465_v15, %v3176_v48  ;;  %v480_v33 = vrot.slane %v473_v25, %v3176_v48  ;;  %v1533_v36 = vpack.i.b16 %v1532_v27, %v1531_v52  ;;  %v1543_v40 = vcombine.low %v1513_v12, %v1529_v20 }
 0x2d6   :  { %v1541_v42 = vpack.i.b16 %v1540_v18, %v1539_v24  ;;  %v1551_v53 = vcombine.low %v1521_v11, %v1537_v30  ;;  %v463_v22 = vrot.slane %v456_v28, %v3182_v1  ;;  %v941_v0 = vsel %vm844_vm2, %v666_v35, 0 }
 0x2d7   :  { %v481_v54 = vcombine.low %v472_v21, %v480_v33  ;;  %v1568_v34 = vcombine.low %v1517_v26, %v1533_v36  ;;  %v1550_v55 = vrot.slane %v1543_v40, %v3176_v48 }
 0x2d8   :  { %v1558_v49 = vrot.slane %v1551_v53, %v3176_v48  ;;  %v1576_v56 = vcombine.low %v1525_v29, %v1541_v42  ;;  %v493_v60 = vshrl.u32 %v463_v22, 16  ;;  %v464_v32 = vcombine.high %v463_v22, %v3015_v23 }
 0x2d9   :  { %v488_v47 = vrot.slane %v481_v54, %v3182_v1  ;;  %v1575_v57 = vrot.slane %v1568_v34, %v3176_v48 }
 0x2da   :  { %v1559_v51 = vcombine.low %v1550_v55, %v1558_v49  ;;  %v1583_v58 = vrot.slane %v1576_v56, %v3176_v48  ;;  %v499_v16 = vshrl.u32 %v464_v32, 16 }
 0x2db   :  { %v492_v52 = vpack.i.b16 %v488_v47, %v463_v22  ;;  %v494_v61 = vshrl.u32 %v488_v47, 16  ;;  %v489_v3 = vcombine.high %v488_v47, %v3015_v23 }
 0x2dc   :  { %v3324_v62 = vrot.slane %v1559_v51, %v3182_v1  ;;  %v1584_v63 = vcombine.low %v1575_v57, %v1583_v58 }
 0x2dd   :  { %2735 = vmatmul.mubr.msk.bf16.vlgmr.msra.gmra.mrb[4].mxu1 %vm844_vm2, %v492_v52  ;;  %v495_v2 = vpack.i.b16 %v494_v61, %v493_v60  ;;  %v500_v39 = vshrl.u32 %v489_v3, 16  ;;  %v498_v15 = vpack.i.b16 %v489_v3, %v464_v32 }
 0x2de   :  { %2745 = vmatpush3.bf16.xpose.msra.mxu1 %v941_v0  ;;  %2746 = vmatprep.mubr.msk.bf16.mxu1 %vm3009_vm1, %v3008_v5  ;;  %v3335_v6 = vrot.slane %v1584_v63, %v3182_v1  ;;  %v3339_v7 = vcombine.high %v3324_v62, %v3015_v23  ;;  %v1596_v4 = vshrl.u32 %v3324_v62, 16 }
 0x2df   :  { %2741 = vmatmul.mubr.msk.bf16.vlgmr.msra.gmra.mrb[8].mxu0 %vm844_vm2, %v495_v2  ;;  %2756 = vmatprep.subr.bf16.mxu1 %v3008_v5  ;;  %v501_v11 = vpack.i.b16 %v500_v39, %v499_v16  ;;  %v1771_v2 = vrot.slane %v3287_v59, 4 }
 0x2e0   :  { %2751 = vmatpush3.bf16.xpose.msra.mxu0 %v987_v31  ;;  %2752 = vmatprep.mubr.msk.bf16.mxu0 %vm3009_vm1, %v3008_v5  ;;  %v1595_v35 = vpack.i.b16 %v3335_v6, %v3324_v62  ;;  %v1597_v8 = vshrl.u32 %v3335_v6, 16  ;;  %v3354_v9 = vcombine.high %v3335_v6, %v3015_v23  ;;  %v1602_v13 = vshrl.u32 %v3339_v7, 16 }
 0x2e1   :  { %2762 = vmatprep.subr.bf16.mxu0 %v3008_v5  ;;  %v683_v31 = vrot.slane %v3287_v59, %v3176_v48  ;;  %v1782_v39 = vrot.slane %v1771_v2, %v3176_v48 }
 0x2e2   :  { %v3357_v10 = vpack.i.b16 %v1597_v8, %v1596_v4  ;;  %v1601_v12 = vpack.i.b16 %v3354_v9, %v3339_v7  ;;  %v1603_v14 = vshrl.u32 %v3354_v9, 16 }
 0x2e4   :  { %v3363_v17 = vpack.i.b16 %v1603_v14, %v1602_v13 }
 0x2e5   :  { %2747 = vmatmul.mubr.msk.bf16.vlgmr.msra.gmra.mrb[8].mxu1 %vm844_vm2, %v498_v15 }
 0x2e6   :  { %2758 = vmatprep.mubr.msk.bf16.mxu1 %vm3009_vm1, %v3008_v5 }
 0x2e7   :  { %2753 = vmatmul.mubr.msk.bf16.vlgmr.msra.gmra.mrb[12].mxu0 %vm844_vm2, %v501_v11 }
 0x2e8   :  { %2764 = vmatprep.mubr.msk.bf16.mxu0 %vm3009_vm1, %v3008_v5 }
 0x3b0   :  { %v885_v20 = vpop.f32.mrb[4].mxu1 }
 0x3b1   :  { %v886_v24 = vadd.f32 %v2639_v19, %v885_v20  ;;  %v2736_v25 = vpop.f32.mrb[5].mxu1 }
 0x3b2   :  { %v888_v26 = vpop.f32.mrb[6].mxu1  ;;  %v931_v27 = vpop.f32.mrb[8].mxu0 }
 0x3b3   :  { %v932_v28 = vadd.f32 %v2639_v19, %v931_v27  ;;  %v2737_v29 = vpop.f32.mrb[7].mxu1  ;;  %v2742_v30 = vpop.f32.mrb[9].mxu0  ;;  %v1030_v18 = vsel %vm1029_vm3, %v886_v24, -inf }
 0x3b4   :  { %1031 = vmax.xlane.f32.xlu0 %v1030_v18  ;;  %v934_v21 = vpop.f32.mrb[10].mxu0 }
 0x3b5   :  { %v2743_v33 = vpop.f32.mrb[11].mxu0  ;;  %v1033_v36 = vsel %vm1029_vm3, %v932_v28, -inf }
 0x3b6   :  { %1034 = vmax.xlane.f32.xlu1 %v1033_v36 }
 0x3b8   :  { %v977_v40 = vpop.f32.mrb[8].mxu1 }
 0x3b9   :  { %v978_v42 = vadd.f32 %v2639_v19, %v977_v40  ;;  %v2748_v53 = vpop.f32.mrb[9].mxu1 }
 0x3ba   :  { %v980_v54 = vpop.f32.mrb[10].mxu1  ;;  %v1023_v34 = vpop.f32.mrb[12].mxu0 }
 0x3bb   :  { %v1024_v22 = vadd.f32 %v2639_v19, %v1023_v34  ;;  %v2749_v55 = vpop.f32.mrb[11].mxu1  ;;  %v2754_v49 = vpop.f32.mrb[13].mxu0  ;;  %v1036_v56 = vsel %vm1029_vm3, %v978_v42, -inf }
 0x3bc   :  { %1037 = vmax.xlane.f32.xlu0 %v1036_v56  ;;  %v1026_v47 = vpop.f32.mrb[14].mxu0 }
 0x3bd   :  { %v2755_v51 = vpop.f32.mrb[15].mxu0  ;;  %v1039_v57 = vsel %vm1029_vm3, %v1024_v22, -inf }
 0x3c0   :  { %1040 = vmax.xlane.f32.xlu0 %v1039_v57 }
 0x3c7   :  { %673 = vrot.lane.b32.xlu1 %v3287_v59, %s3010_s19 }
 0x3cb   :  { %675 = vrot.lane.b32.xlu1 %v3287_v59, %s3012_s21 }
 0x3d6   :  { %671 = vrot.lane.b32.xlu0 %v3287_v59, %s3011_s20 }
 0x441   :  { %v1032_v58 = vpop.xlane.xlu0 %1031 }
 0x442   :  { %v1042_v52 = vsub.f32 %v886_v24, %v1032_v58 }
 0x443   :  { %v1035_v60 = vpop.xlane.xlu1 %1034 }
 0x444   :  { %v1046_v61 = vmul.f32 1.442695, %v1042_v52  ;;  %v1043_v63 = vsub.f32 %v932_v28, %v1035_v60 }
 0x446   :  { %2875 = vpow2.f32 %v1046_v61  ;;  %v1048_v0 = vmul.f32 1.442695, %v1043_v63 }
 0x447   :  { %v674_v3 = vpop.permute.xlu1 %673 }
 0x448   :  { %2877 = vpow2.f32 %v1048_v0  ;;  %v691_v32 = vrot.slane %v674_v3, %v3176_v48  ;;  %v1773_v4 = vrot.slane %v674_v3, 4 }
 0x449   :  { %v1038_v8 = vpop.xlane.xlu0 %1037 }
 0x44a   :  { %v692_v13 = vcombine.low %v683_v31, %v691_v32  ;;  %v1790_v14 = vrot.slane %v1773_v4, %v3176_v48  ;;  %v1044_v15 = vsub.f32 %v978_v42, %v1038_v8  ;;  %v693_v16 = vcombine.high %v683_v31, %v691_v32 }
 0x44b   :  { %v676_v19 = vpop.permute.xlu1 %675 }
 0x44c   :  { %v1791_v11 = vcombine.low %v1782_v39, %v1790_v14  ;;  %v700_v20 = vrot.slane %v692_v13, %v3182_v1  ;;  %v1792_v24 = vcombine.high %v1782_v39, %v1790_v14  ;;  %v1050_v25 = vmul.f32 1.442695, %v1044_v15 }
 0x44d   :  { %v1041_v26 = vpop.xlane.xlu0 %1040  ;;  %v707_v59 = vrot.slane %v693_v16, %v3182_v1  ;;  %v1774_v28 = vrot.slane %v676_v19, 4  ;;  %v725_v33 = vrot.slane %v676_v19, %v3176_v48 }
 0x44e   :  { %v3393_v27 = vrot.slane %v1791_v11, %v3182_v1  ;;  %v1045_v30 = vsub.f32 %v1024_v22, %v1041_v26  ;;  %v708_v18 = vcombine.high %v700_v20, %v3015_v23  ;;  %v3399_v21 = vrot.slane %v1792_v24, %v3182_v1 }
 0x44f   :  { %2879 = vpow2.f32 %v1050_v25  ;;  %v709_v22 = vcombine.high %v707_v59, %v3015_v23  ;;  %v1824_v49 = vrot.slane %v1774_v28, %v3176_v48  ;;  %v748_v58 = vshrl.u32 %v700_v20, 16 }
 0x450   :  { %v3395_v29 = vpop.eup %2875  ;;  %v1052_v42 = vmul.f32 1.442695, %v1045_v30  ;;  %v3410_v55 = vcombine.high %v3393_v27, %v3015_v23  ;;  %v756_v52 = vshrl.u32 %v708_v18, 16  ;;  %v764_v60 = vshrl.u32 %v707_v59, 16 }
 0x451   :  { %v672_v36 = vpop.permute.xlu0 %671  ;;  %v1054_v34 = vsel %vm1029_vm3, %v3395_v29, 0.0  ;;  %v1808_v61 = vcombine.high %v3399_v21, %v3015_v23  ;;  %v772_v31 = vshrl.u32 %v709_v22, 16  ;;  %v1847_v32 = vshrl.u32 %v3393_v27, 16 }
 0x452   :  { %v3402_v40 = vpop.eup %2877  ;;  %v717_v53 = vrot.slane %v672_v36, %v3176_v48  ;;  %v1772_v54 = vrot.slane %v672_v36, 4  ;;  %1055 = vadd.xlane.f32.xlu1 %v1054_v34  ;;  %2881 = vpow2.f32 %v1052_v42  ;;  %v1855_v4 = vshrl.u32 %v3410_v55, 16 }
 0x453   :  { %v1057_v56 = vsel %vm1029_vm3, %v3402_v40, 0.0  ;;  %v1863_v8 = vshrl.u32 %v3399_v21, 16  ;;  %v1871_v25 = vshrl.u32 %v1808_v61, 16 }
 0x454   :  { %v726_v47 = vcombine.low %v717_v53, %v725_v33  ;;  %v727_v51 = vcombine.high %v717_v53, %v725_v33  ;;  %v1816_v57 = vrot.slane %v1772_v54, %v3176_v48  ;;  %1058 = vadd.xlane.f32.xlu0 %v1057_v56 }
 0x456   :  { %v734_v63 = vrot.slane %v726_v47, %v3182_v1  ;;  %v741_v0 = vrot.slane %v727_v51, %v3182_v1  ;;  %v1825_v2 = vcombine.low %v1816_v57, %v1824_v49  ;;  %v1826_v3 = vcombine.high %v1816_v57, %v1824_v49 }
 0x458   :  { %v742_v39 = vcombine.high %v734_v63, %v3015_v23  ;;  %v743_v13 = vcombine.high %v741_v0, %v3015_v23  ;;  %v746_v14 = vpack.i.b16 %v734_v63, %v700_v20  ;;  %v749_v15 = vshrl.u32 %v734_v63, 16 }
 0x459   :  { %v762_v16 = vpack.i.b16 %v741_v0, %v707_v59  ;;  %v765_v11 = vshrl.u32 %v741_v0, 16  ;;  %v1833_v19 = vrot.slane %v1825_v2, %v3182_v1  ;;  %v1840_v24 = vrot.slane %v1826_v3, %v3182_v1  ;;  %v3427_v33 = vpop.eup %2879 }
 0x45a   :  { %v754_v26 = vpack.i.b16 %v742_v39, %v708_v18  ;;  %v757_v28 = vshrl.u32 %v742_v39, 16  ;;  %v770_v30 = vpack.i.b16 %v743_v13, %v709_v22  ;;  %v750_v36 = vpack.i.b16 %v749_v15, %v748_v58 }
 0x45b   :  { %v766_v42 = vpack.i.b16 %v765_v11, %v764_v60  ;;  %v773_v53 = vshrl.u32 %v743_v13, 16  ;;  %v1841_v54 = vcombine.high %v1833_v19, %v3015_v23  ;;  %v776_v20 = vcombine.low %v746_v14, %v762_v16 }
 0x45c   :  { %v758_v34 = vpack.i.b16 %v757_v28, %v756_v52  ;;  %v1842_v59 = vcombine.high %v1840_v24, %v3015_v23  ;;  %v1845_v49 = vpack.i.b16 %v1833_v19, %v3393_v27  ;;  %v784_v47 = vcombine.low %v754_v26, %v770_v30  ;;  %v3433_v57 = vpop.eup %2881 }
 0x45d   :  { %v774_v56 = vpack.i.b16 %v773_v53, %v772_v31  ;;  %v1848_v51 = vshrl.u32 %v1833_v19, 16  ;;  %v1853_v18 = vpack.i.b16 %v1841_v54, %v3410_v55  ;;  %v1856_v22 = vshrl.u32 %v1841_v54, 16 }
 0x45e   :  { %v1861_v58 = vpack.i.b16 %v1840_v24, %v3399_v21  ;;  %v1864_v60 = vshrl.u32 %v1840_v24, 16  ;;  %v1869_v63 = vpack.i.b16 %v1842_v59, %v1808_v61  ;;  %v801_v0 = vcombine.low %v750_v36, %v766_v42 }
 0x45f   :  { %v1849_v2 = vpack.i.b16 %v1848_v51, %v1847_v32  ;;  %v1872_v52 = vshrl.u32 %v1842_v59, 16  ;;  %v1060_v3 = vsel %vm1029_vm3, %v3427_v33, 0.0  ;;  %v1857_v39 = vpack.i.b16 %v1856_v22, %v1855_v4 }
 0x460   :  { %v1865_v27 = vpack.i.b16 %v1864_v60, %v1863_v8  ;;  %v1875_v31 = vcombine.low %v1845_v49, %v1861_v58  ;;  %1061 = vadd.xlane.f32.xlu0 %v1060_v3  ;;  %v1063_v55 = vsel %vm1029_vm3, %v3433_v57, 0.0  ;;  %v783_v14 = vrot.slane %v776_v20, %v3176_v48 }
 0x461   :  { %v1873_v13 = vpack.i.b16 %v1872_v52, %v1871_v25  ;;  %v791_v21 = vrot.slane %v784_v47, %v3176_v48  ;;  %v809_v15 = vcombine.low %v758_v34, %v774_v56  ;;  %v1883_v61 = vcombine.low %v1853_v18, %v1869_v63 }
 0x462   :  { %v1900_v16 = vcombine.low %v1849_v2, %v1865_v27  ;;  %v808_v11 = vrot.slane %v801_v0, %v3176_v48  ;;  %v1882_v8 = vrot.slane %v1875_v31, %v3176_v48 }
 0x463   :  { %v792_v32 = vcombine.low %v783_v14, %v791_v21  ;;  %v816_v19 = vrot.slane %v809_v15, %v3176_v48  ;;  %v1908_v4 = vcombine.low %v1857_v39, %v1873_v13  ;;  %v1890_v24 = vrot.slane %v1883_v61, %v3176_v48 }
 0x464   :  { %1064 = vadd.xlane.f32.xlu0 %v1063_v55  ;;  %v1907_v28 = vrot.slane %v1900_v16, %v3176_v48 }
 0x465   :  { %v799_v25 = vrot.slane %v792_v32, %v3182_v1  ;;  %v817_v26 = vcombine.low %v808_v11, %v816_v19  ;;  %v1915_v30 = vrot.slane %v1908_v4, %v3176_v48  ;;  %v1891_v36 = vcombine.low %v1882_v8, %v1890_v24 }
 0x467   :  { %v824_v42 = vrot.slane %v817_v26, %v3182_v1  ;;  %v800_v53 = vcombine.high %v799_v25, %v3015_v23  ;;  %v1916_v54 = vcombine.low %v1907_v28, %v1915_v30  ;;  %v3452_v34 = vrot.slane %v1891_v36, %v3182_v1 }
 0x468   :  { %v829_v59 = vshrl.u32 %v799_v25, 16  ;;  %v1947_v28 = vsel %vm844_vm2, %v1761_v41, 0 }
 0x469   :  { %v828_v20 = vpack.i.b16 %v824_v42, %v799_v25  ;;  %v830_v49 = vshrl.u32 %v824_v42, 16  ;;  %v825_v56 = vcombine.high %v824_v42, %v3015_v23  ;;  %v835_v47 = vshrl.u32 %v800_v53, 16 }
 0x46a   :  { %v3456_v51 = vrot.slane %v1916_v54, %v3182_v1  ;;  %v3460_v18 = vcombine.high %v3452_v34, %v3015_v23  ;;  %v1928_v43 = vshrl.u32 %v3452_v34, 16 }
 0x46b   :  { %v1083_v22 = vsel %vm1081_vm4, %v828_v20, 0  ;;  %v831_v58 = vpack.i.b16 %v830_v49, %v829_v59  ;;  %v834_v60 = vpack.i.b16 %v825_v56, %v800_v53  ;;  %v836_v63 = vshrl.u32 %v825_v56, 16 }
 0x46c   :  { %2757 = vmatpush3.bf16.msra.mxu1 %v1083_v22  ;;  %v3465_v0 = vcombine.high %v3456_v51, %v3015_v23  ;;  %v1934_v39 = vshrl.u32 %v3460_v18, 16  ;;  %v1927_v41 = vpack.i.b16 %v3456_v51, %v3452_v34 }
 0x46d   :  { %v1129_v2 = vsel %vm1081_vm4, %v831_v58, 0  ;;  %2768 = vmatprep.subr.bf16.mxu1 %v3008_v5  ;;  %v837_v52 = vpack.i.b16 %v836_v63, %v835_v47  ;;  %v1175_v19 = vsel %vm1081_vm4, %v834_v60, 0 }
 0x46e   :  { %2763 = vmatpush3.bf16.msra.mxu0 %v1129_v2  ;;  %v1933_v3 = vpack.i.b16 %v3465_v0, %v3460_v18  ;;  %v1935_v27 = vshrl.u32 %v3465_v0, 16  ;;  %v2179_v44 = vsel %vm1081_vm4, %v1927_v41, 0 }
 0x46f   :  { %2774 = vmatprep.subr.bf16.mxu0 %v3008_v5  ;;  %v1221_v8 = vsel %vm1081_vm4, %v837_v52, 0 }
 0x470   :  { %v3474_v31 = vpack.i.b16 %v1935_v27, %v1934_v39  ;;  %v2648_v27 = vld [vmem:[%s3688_s3 + $0x1] ss:$0 sm:$0xff]  ;;  %s3016_s3 = smov 16  }
 0x4df   :  { %v1056_v55 = vpop.xlane.xlu1 %1055 }
 0x4e0   :  { %2883 = vrcp.f32 %v1056_v55 }
 0x4e1   :  { %v1059_v13 = vpop.xlane.xlu0 %1058 }
 0x4e2   :  { %2885 = vrcp.f32 %v1059_v13 }
 0x4ea   :  { %v2884_v14 = vpop.eup %2883 }
 0x4eb   :  { %v1070_v15 = vmul.f32 %v2884_v14, %v3395_v29 }
 0x4ec   :  { %v2886_v21 = vpop.eup %2885 }
 0x4ed   :  { %v1071_v61 = vmul.f32 %v2886_v21, %v3402_v40  ;;  %v1062_v16 = vpop.xlane.xlu0 %1061  ;;  %v1074_v32 = vpack.c.bf16 %v1070_v15, %v1070_v15 }
 0x4ee   :  { %2887 = vrcp.f32 %v1062_v16 }
 0x4ef   :  { %v1075_v11 = vpack.c.bf16 %v1071_v61, %v1071_v61  ;;  %2759 = vmatmul.mubr.msk.bf16.vlgmr.msra.gmra.mrb[12].mxu1 %vm1029_vm3, %v1074_v32 }
 0x4f0   :  { %2769 = vmatpush3.bf16.msra.mxu1 %v1175_v19  ;;  %2770 = vmatprep.mubr.msk.bf16.mxu1 %vm3009_vm1, %v3008_v5 }
 0x4f1   :  { %v1065_v4 = vpop.xlane.xlu0 %1064  ;;  %2765 = vmatmul.mubr.msk.bf16.vlgmr.msra.gmra.mrb[16].mxu0 %vm1029_vm3, %v1075_v11  ;;  %2780 = vmatprep.subr.bf16.mxu1 %v3008_v5 }
 0x4f2   :  { %2889 = vrcp.f32 %v1065_v4  ;;  %2775 = vmatpush3.bf16.msra.mxu0 %v1221_v8  ;;  %2776 = vmatprep.mubr.msk.bf16.mxu0 %vm3009_vm1, %v3008_v5 }
 0x4f3   :  { %2786 = vmatprep.subr.bf16.mxu0 %v3008_v5 }
 0x4f8   :  { %v2888_v29 = vpop.eup %2887 }
 0x4f9   :  { %v1072_v40 = vmul.f32 %v2888_v29, %v3427_v33  ;;  %v1993_v33 = vsel %vm844_vm2, %v3276_v45, 0  ;;  %v1929_v45 = vshrl.u32 %v3456_v51, 16 }
 0x4fb   :  { %v1076_v24 = vpack.c.bf16 %v1072_v40, %v1072_v40  ;;  %v1930_v46 = vpack.i.b16 %v1929_v45, %v1928_v43 }
 0x4fc   :  { %v2890_v25 = vpop.eup %2889 }
 0x4fd   :  { %v1073_v26 = vmul.f32 %v2890_v25, %v3433_v57  ;;  %2771 = vmatmul.mubr.msk.bf16.vlgmr.msra.gmra.mrb[16].mxu1 %vm1029_vm3, %v1076_v24  ;;  %v2225_v50 = vsel %vm1081_vm4, %v1930_v46, 0 }
 0x4fe   :  { %2781 = vmatpush3.bf16.xpose.msra.mxu1 %v1947_v28  ;;  %2782 = vmatprep.mubr.msk.bf16.mxu1 %vm3009_vm1, %v3008_v5 }
 0x4ff   :  { %v1077_v30 = vpack.c.bf16 %v1073_v26, %v1073_v26  ;;  %2792 = vmatprep.subr.bf16.mxu1 %v3008_v5 }
 0x501   :  { %2777 = vmatmul.mubr.msk.bf16.vlgmr.msra.gmra.mrb[20].mxu0 %vm1029_vm3, %v1077_v30 }
 0x502   :  { %2787 = vmatpush3.bf16.xpose.msra.mxu0 %v1993_v33  ;;  %2788 = vmatprep.mubr.msk.bf16.mxu0 %vm3009_vm1, %v3008_v5 }
 0x503   :  { %2798 = vmatprep.subr.bf16.mxu0 %v3008_v5 }
 0x505   :  { %2783 = vmatmul.mubr.msk.bf16.vlgmr.msra.gmra.mrb[20].mxu1 %vm844_vm2, %v1595_v35 }
 0x506   :  { %2793 = vmatpush3.bf16.xpose.msra.mxu1 %v2039_v37  ;;  %2794 = vmatprep.mubr.msk.bf16.mxu1 %vm3009_vm1, %v3008_v5 }
 0x507   :  { %2804 = vmatprep.subr.bf16.mxu1 %v3008_v5 }
 0x509   :  { %2789 = vmatmul.mubr.msk.bf16.vlgmr.msra.gmra.mrb[24].mxu0 %vm844_vm2, %v3357_v10 }
 0x50a   :  { %2799 = vmatpush3.bf16.xpose.msra.mxu0 %v2085_v38  ;;  %2800 = vmatprep.mubr.msk.bf16.mxu0 %vm3009_vm1, %v3008_v5 }
 0x50b   :  { %2810 = vmatprep.subr.bf16.mxu0 %v3008_v5 }
 0x50d   :  { %2795 = vmatmul.mubr.msk.bf16.vlgmr.msra.gmra.mrb[24].mxu1 %vm844_vm2, %v1601_v12 }
 0x50e   :  { %2805 = vmatpush3.bf16.msra.mxu1 %v2179_v44  ;;  %2806 = vmatprep.mubr.msk.bf16.mxu1 %vm3009_vm1, %v3008_v5 }
 0x50f   :  { %2816 = vmatprep.subr.bf16.mxu1 %v3008_v5 }
 0x511   :  { %2801 = vmatmul.mubr.msk.bf16.vlgmr.msra.gmra.mrb[28].mxu0 %vm844_vm2, %v3363_v17 }
 0x512   :  { %2811 = vmatpush3.bf16.msra.mxu0 %v2225_v50  ;;  %2812 = vmatprep.mubr.msk.bf16.mxu0 %vm3009_vm1, %v3008_v5 }
 0x513   :  { %2822 = vmatprep.subr.bf16.mxu0 %v3008_v5 }
 0x5c2   :  { %v1119_v62 = vpop.f32.mrb[12].mxu1 }
 0x5c3   :  { %v2760_v6 = vpop.f32.mrb[13].mxu1  ;;  %v1263_v36 = vpack.c.bf16 %v1119_v62, %v1119_v62 }
 0x5c4   :  { %v1165_v7 = vpop.f32.mrb[16].mxu0  ;;  %v1122_v35 = vpop.f32.mrb[14].mxu1 }
 0x5c5   :  { %v2766_v9 = vpop.f32.mrb[17].mxu0  ;;  %v2761_v10 = vpop.f32.mrb[15].mxu1  ;;  %v1270_v34 = vrot.slane %v1263_v36, %v3176_v48  ;;  %v1297_v49 = vpack.c.bf16 %v1165_v7, %v1165_v7 }
 0x5c6   :  { %v1168_v12 = vpop.f32.mrb[18].mxu0 }
 0x5c7   :  { %v2767_v57 = vpop.f32.mrb[19].mxu0  ;;  %v1304_v55 = vrot.slane %v1297_v49, %v3176_v48 }
 0x5d0   :  { %v1211_v42 = vpop.f32.mrb[16].mxu1 }
 0x5d1   :  { %v1271_v53 = vpack.c.bf16 %v1211_v42, %v1211_v42  ;;  %v2772_v17 = vpop.f32.mrb[17].mxu1 }
 0x5d2   :  { %v1214_v54 = vpop.f32.mrb[18].mxu1 }
 0x5d3   :  { %v1278_v20 = vrot.slane %v1271_v53, %v3176_v48  ;;  %v2773_v59 = vpop.f32.mrb[19].mxu1 }
 0x5d4   :  { %v1257_v56 = vpop.f32.mrb[20].mxu0 }
 0x5d5   :  { %v1279_v47 = vcombine.low %v1270_v34, %v1278_v20  ;;  %v1280_v51 = vcombine.high %v1270_v34, %v1278_v20  ;;  %v1305_v22 = vpack.c.bf16 %v1257_v56, %v1257_v56  ;;  %v2778_v58 = vpop.f32.mrb[21].mxu0 }
 0x5d6   :  { %v1260_v60 = vpop.f32.mrb[22].mxu0 }
 0x5d7   :  { %v1287_v63 = vrot.slane %v1279_v47, %v3182_v1  ;;  %v1294_v2 = vrot.slane %v1280_v51, %v3182_v1  ;;  %v1312_v52 = vrot.slane %v1305_v22, %v3176_v48  ;;  %v2779_v39 = vpop.f32.mrb[23].mxu0 }
 0x5d8   :  { %v1983_v13 = vpop.f32.mrb[20].mxu1 }
 0x5d9   :  { %v1295_v14 = vcombine.high %v1287_v63, %v3015_v23  ;;  %v2784_v21 = vpop.f32.mrb[21].mxu1  ;;  %v1313_v15 = vcombine.low %v1304_v55, %v1312_v52  ;;  %v1314_v61 = vcombine.high %v1304_v55, %v1312_v52  ;;  %v3550_v16 = vadd.f32 %v2648_v27, %v1983_v13 }
 0x5da   :  { %v1986_v32 = vpop.f32.mrb[22].mxu1  ;;  %v1296_v11 = vcombine.high %v1294_v2, %v3015_v23  ;;  %v1335_v24 = vshrl.u32 %v1287_v63, 16  ;;  %v1351_v26 = vshrl.u32 %v1294_v2, 16 }
 0x5db   :  { %v2785_v19 = vpop.f32.mrb[23].mxu1  ;;  %v1321_v4 = vrot.slane %v1313_v15, %v3182_v1  ;;  %v1328_v8 = vrot.slane %v1314_v61, %v3182_v1  ;;  %v2127_v29 = vsel %vm1029_vm3, %v3550_v16, -inf  ;;  %v1343_v25 = vshrl.u32 %v1295_v14, 16 }
 0x5dc   :  { %v2029_v40 = vpop.f32.mrb[24].mxu0  ;;  %2128 = vmax.xlane.f32.xlu1 %v2127_v29  ;;  %v1359_v43 = vshrl.u32 %v1296_v11, 16 }
 0x5dd   :  { %v3557_v28 = vadd.f32 %v2648_v27, %v2029_v40  ;;  %v2790_v30 = vpop.f32.mrb[25].mxu0  ;;  %v1329_v33 = vcombine.high %v1321_v4, %v3015_v23  ;;  %v1330_v37 = vcombine.high %v1328_v8, %v3015_v23  ;;  %v1333_v38 = vpack.i.b16 %v1321_v4, %v1287_v63 }
 0x5de   :  { %v1336_v41 = vshrl.u32 %v1321_v4, 16  ;;  %v2032_v45 = vpop.f32.mrb[26].mxu0  ;;  %v1349_v44 = vpack.i.b16 %v1328_v8, %v1294_v2  ;;  %v1352_v46 = vshrl.u32 %v1328_v8, 16 }
 0x5df   :  { %v2791_v50 = vpop.f32.mrb[27].mxu0  ;;  %v2130_v62 = vsel %vm1029_vm3, %v3557_v28, -inf  ;;  %v1341_v7 = vpack.i.b16 %v1329_v33, %v1295_v14  ;;  %v1344_v35 = vshrl.u32 %v1329_v33, 16  ;;  %v1357_v9 = vpack.i.b16 %v1330_v37, %v1296_v11 }
 0x5e0   :  { %v1337_v6 = vpack.i.b16 %v1336_v41, %v1335_v24  ;;  %v2075_v10 = vpop.f32.mrb[24].mxu1  ;;  %2131 = vmax.xlane.f32.xlu0 %v2130_v62  ;;  %v1353_v12 = vpack.i.b16 %v1352_v46, %v1351_v26  ;;  %v1360_v57 = vshrl.u32 %v1330_v37, 16  ;;  %v1363_v36 = vcombine.low %v1333_v38, %v1349_v44 }
 0x5e1   :  { %v2076_v42 = vadd.f32 %v2648_v27, %v2075_v10  ;;  %v2796_v53 = vpop.f32.mrb[25].mxu1  ;;  %v1345_v17 = vpack.i.b16 %v1344_v35, %v1343_v25  ;;  %v1371_v54 = vcombine.low %v1341_v7, %v1357_v9 }
 0x5e2   :  { %v2078_v34 = vpop.f32.mrb[26].mxu1  ;;  %v1361_v20 = vpack.i.b16 %v1360_v57, %v1359_v43  ;;  %v1388_v59 = vcombine.low %v1337_v6, %v1353_v12  ;;  %v1370_v51 = vrot.slane %v1363_v36, %v3176_v48 }
 0x5e3   :  { %v2797_v49 = vpop.f32.mrb[27].mxu1  ;;  %v2133_v56 = vsel %vm1029_vm3, %v2076_v42, -inf  ;;  %v1378_v22 = vrot.slane %v1371_v54, %v3176_v48 }
 0x5e4   :  { %2134 = vmax.xlane.f32.xlu1 %v2133_v56  ;;  %v2121_v47 = vpop.f32.mrb[28].mxu0  ;;  %v1396_v63 = vcombine.low %v1345_v17, %v1361_v20  ;;  %v1395_v13 = vrot.slane %v1388_v59, %v3176_v48  ;;  %v2271_v49 = vsel %vm1081_vm4, %v1933_v3, 0 }
 0x5e5   :  { %v2122_v58 = vadd.f32 %v2648_v27, %v2121_v47  ;;  %v2802_v60 = vpop.f32.mrb[29].mxu0  ;;  %v1379_v52 = vcombine.low %v1370_v51, %v1378_v22  ;;  %v2317_v22 = vsel %vm1081_vm4, %v3474_v31, 0 }
 0x5e6   :  { %v2124_v2 = vpop.f32.mrb[30].mxu0  ;;  %v1403_v14 = vrot.slane %v1396_v63, %v3176_v48  ;;  %v2867_v60 = vld [vmem:[%s3692_s7] sm:$0xff]  }
 0x5e7   :  { %v2803_v39 = vpop.f32.mrb[31].mxu0  ;;  %v2136_v55 = vsel %vm1029_vm3, %v2122_v58, -inf  ;;  %v3570_v21 = vrot.slane %v1379_v52, %v3182_v1 }
 0x5e8   :  { %2137 = vmax.xlane.f32.xlu0 %v2136_v55  ;;  %v1404_v15 = vcombine.low %v1395_v13, %v1403_v14 }
 0x5e9   :  { %v3577_v27 = vcombine.high %v3570_v21, %v3015_v23  ;;  %v1416_v32 = vshrl.u32 %v3570_v21, 16 }
 0x5ea   :  { %v3573_v61 = vrot.slane %v1404_v15, %v3182_v1 }
 0x5eb   :  { %v1422_v29 = vshrl.u32 %v3577_v27, 16 }
 0x5ec   :  { %v1417_v11 = vshrl.u32 %v3573_v61, 16  ;;  %v1415_v19 = vpack.i.b16 %v3573_v61, %v3570_v21  ;;  %v3585_v4 = vcombine.high %v3573_v61, %v3015_v23 }
 0x5ee   :  { %v1418_v8 = vpack.i.b16 %v1417_v11, %v1416_v32  ;;  %v1423_v40 = vshrl.u32 %v3585_v4, 16  ;;  %v1421_v24 = vpack.i.b16 %v3585_v4, %v3577_v27 }
 0x5f0   :  { %v3591_v25 = vpack.i.b16 %v1423_v40, %v1422_v29 }
 0x669   :  { %v2129_v26 = vpop.xlane.xlu1 %2128 }
 0x66a   :  { %v2139_v30 = vsub.f32 %v3550_v16, %v2129_v26 }
 0x66c   :  { %v2143_v33 = vmul.f32 1.442695, %v2139_v30 }
 0x66d   :  { %v2132_v37 = vpop.xlane.xlu0 %2131 }
 0x66e   :  { %v2140_v38 = vsub.f32 %v3557_v28, %v2132_v37  ;;  %2891 = vpow2.f32 %v2143_v33 }
 0x670   :  { %v2145_v41 = vmul.f32 1.442695, %v2140_v38 }
 0x671   :  { %v2135_v45 = vpop.xlane.xlu1 %2134 }
 0x672   :  { %2893 = vpow2.f32 %v2145_v41  ;;  %v2141_v43 = vsub.f32 %v2076_v42, %v2135_v45 }
 0x674   :  { %v2147_v44 = vmul.f32 1.442695, %v2141_v43 }
 0x675   :  { %v2138_v46 = vpop.xlane.xlu0 %2137 }
 0x676   :  { %2895 = vpow2.f32 %v2147_v44  ;;  %v2142_v50 = vsub.f32 %v2122_v58, %v2138_v46 }
 0x678   :  { %v2149_v62 = vmul.f32 1.442695, %v2142_v50  ;;  %v2892_v6 = vpop.eup %2891 }
 0x679   :  { %v2151_v7 = vsel %vm1029_vm3, %v2892_v6, 0.0 }
 0x67a   :  { %2897 = vpow2.f32 %v2149_v62  ;;  %2152 = vadd.xlane.f32.xlu1 %v2151_v7 }
 0x67c   :  { %v2894_v16 = vpop.eup %2893 }
 0x67d   :  { %v2154_v35 = vsel %vm1029_vm3, %v2894_v16, 0.0 }
 0x67e   :  { %2155 = vadd.xlane.f32.xlu0 %v2154_v35 }
 0x680   :  { %v2896_v28 = vpop.eup %2895 }
 0x681   :  { %v2157_v9 = vsel %vm1029_vm3, %v2896_v28, 0.0 }
 0x682   :  { %2158 = vadd.xlane.f32.xlu1 %v2157_v9 }
 0x684   :  { %v2898_v10 = vpop.eup %2897 }
 0x685   :  { %v2160_v12 = vsel %vm1029_vm3, %v2898_v10, 0.0 }
 0x686   :  { %2161 = vadd.xlane.f32.xlu0 %v2160_v12 }
 0x693   :  { %1425 = vrot.lane.b32.xlu1 %v1418_v8, %s3016_s3 }
 0x707   :  { %v2153_v57 = vpop.xlane.xlu1 %2152 }
 0x708   :  { %2899 = vrcp.f32 %v2153_v57 }
 0x70b   :  { %v2156_v36 = vpop.xlane.xlu0 %2155 }
 0x70c   :  { %2901 = vrcp.f32 %v2156_v36 }
 0x70f   :  { %v2159_v42 = vpop.xlane.xlu1 %2158 }
 0x710   :  { %2903 = vrcp.f32 %v2159_v42 }
 0x712   :  { %v2900_v53 = vpop.eup %2899 }
 0x713   :  { %v2162_v17 = vpop.xlane.xlu0 %2161  ;;  %v2167_v54 = vmul.f32 %v2900_v53, %v2892_v6 }
 0x714   :  { %2905 = vrcp.f32 %v2162_v17 }
 0x715   :  { %v2171_v20 = vpack.c.bf16 %v2167_v54, %v2167_v54 }
 0x716   :  { %v2902_v34 = vpop.eup %2901 }
 0x717   :  { %v2168_v59 = vmul.f32 %v2902_v34, %v2894_v16  ;;  %2807 = vmatmul.mubr.msk.bf16.vlgmr.msra.gmra.mrb[28].mxu1 %vm1029_vm3, %v2171_v20 }
 0x718   :  { %2817 = vmatpush3.bf16.msra.mxu1 %v2271_v49  ;;  %2818 = vmatprep.mubr.msk.bf16.mxu1 %vm3009_vm1, %v3008_v5 }
 0x719   :  { %v2172_v56 = vpack.c.bf16 %v2168_v59, %v2168_v59  ;;  %2828 = vmatprep.subr.bf16.mxu1 %v3008_v5 }
 0x71a   :  { %v2904_v47 = vpop.eup %2903 }
 0x71b   :  { %v2169_v51 = vmul.f32 %v2904_v47, %v2896_v28  ;;  %2813 = vmatmul.mubr.msk.bf16.vlgmr.msra.gmra.mrb[32].mxu0 %vm1029_vm3, %v2172_v56 }
 0x71c   :  { %2823 = vmatpush3.bf16.msra.mxu0 %v2317_v22  ;;  %2824 = vmatprep.mubr.msk.bf16.mxu0 %vm3009_vm1, %v3008_v5 }
 0x71d   :  { %v2173_v18 = vpack.c.bf16 %v2169_v51, %v2169_v51 }
 0x71e   :  { %v2906_v0 = vpop.eup %2905 }
 0x71f   :  { %v2170_v3 = vmul.f32 %v2906_v0, %v2898_v10  ;;  %2819 = vmatmul.mubr.msk.bf16.vlgmr.msra.gmra.mrb[32].mxu1 %vm1029_vm3, %v2173_v18 }
 0x720   :  { %2836 = vmatprep.mubr.msk.bf16.mxu1 %vm3009_vm1, %v3008_v5  ;;  %2829 = vmatpush3.bf16.msra.mxu1 %v2867_v60 }
 0x721   :  { %v2174_v58 = vpack.c.bf16 %v2170_v3, %v2170_v3  ;;  %2830 = vmatprep.subr.bf16.mxu1 %v3008_v5 }
 0x723   :  { %2825 = vmatmul.mubr.msk.bf16.vlgmr.msra.gmra.mrb[36].mxu0 %vm1029_vm3, %v2174_v58 }
 0x7ea   :  { %v2215_v31 = vpop.f32.mrb[28].mxu1 }
 0x7eb   :  { %v2808_v63 = vpop.f32.mrb[29].mxu1  ;;  %v2359_v15 = vpack.c.bf16 %v2215_v31, %v2215_v31 }
 0x7ec   :  { %v2218_v2 = vpop.f32.mrb[30].mxu1 }
 0x7ed   :  { %v2809_v52 = vpop.f32.mrb[31].mxu1  ;;  %v2366_v26 = vrot.slane %v2359_v15, %v3176_v48  ;;  %v2868_v2 = vld [vmem:[%s3692_s7 + $0x8] sm:$0xff]  }
 0x7ee   :  { %v2261_v39 = vpop.f32.mrb[32].mxu0  ;;  %2831 = vmatpush3.bf16.msra.mxu1 %v2868_v2 }
 0x7ef   :  { %v2814_v55 = vpop.f32.mrb[33].mxu0  ;;  %v2393_v29 = vpack.c.bf16 %v2261_v39, %v2261_v39  ;;  %2832 = vmatprep.subr.bf16.mxu1 %v3008_v5 }
 0x7f0   :  { %v2264_v13 = vpop.f32.mrb[34].mxu0 }
 0x7f1   :  { %v2815_v14 = vpop.f32.mrb[35].mxu0  ;;  %v2400_v46 = vrot.slane %v2393_v29, %v3176_v48 }
 0x7f2   :  { %v2307_v32 = vpop.f32.mrb[32].mxu1 }
 0x7f3   :  { %v2367_v11 = vpack.c.bf16 %v2307_v32, %v2307_v32  ;;  %v2820_v8 = vpop.f32.mrb[33].mxu1  ;;  %v2869_v32 = vld [vmem:[%s3692_s7 + $0x10] sm:$0xff]  }
 0x7f4   :  { %v2310_v40 = vpop.f32.mrb[34].mxu1  ;;  %2833 = vmatpush3.bf16.msra.mxu1 %v2869_v32 }
 0x7f5   :  { %v2374_v30 = vrot.slane %v2367_v11, %v3176_v48  ;;  %v2821_v33 = vpop.f32.mrb[35].mxu1  ;;  %2834 = vmatprep.subr.bf16.mxu1 %v3008_v5 }
 0x7f6   :  { %v2353_v37 = vpop.f32.mrb[36].mxu0 }
 0x7f7   :  { %v2401_v38 = vpack.c.bf16 %v2353_v37, %v2353_v37  ;;  %v2826_v41 = vpop.f32.mrb[37].mxu0  ;;  %v2375_v45 = vcombine.low %v2366_v26, %v2374_v30  ;;  %v2376_v43 = vcombine.high %v2366_v26, %v2374_v30  ;;  %v2870_v26 = vld [vmem:[%s3692_s7 + $0x18] sm:$0xff]   ;;  %s3019_s7 = smov [#allocation8]  }
 0x7f8   :  { %v2356_v44 = vpop.f32.mrb[38].mxu0  ;;  %2835 = vmatpush3.bf16.msra.mxu1 %v2870_v26  ;;  %s2613_s26 = sshll.u32 %s3019_s7, 4  ;;  %s2614_s26 = int_to_ptr.vmem [resolvable:$true] %s2613_s26 }
 0x7f9   :  { %v2408_v50 = vrot.slane %v2401_v38, %v3176_v48  ;;  %v2827_v62 = vpop.f32.mrb[39].mxu0  ;;  %v2383_v6 = vrot.slane %v2375_v45, %v3182_v1  ;;  %v2390_v7 = vrot.slane %v2376_v43, %v3182_v1  ;;  %s2975_s14 = scalar_lea.vmem %s2614_s26, 256  ;;  %p2980_p11 = scmp.lt.s32.totalorder %s2614_s26, %s2614_s26 }
 0x7fa   :  { %p2976_p10 = scmp.ne.s32.totalorder %s2614_s26, %s2975_s14  ;;  %p2981_p12 = scmp.lt.s32.totalorder %s2975_s14, %s2975_s14 }
 0x7fb   :  { %v2409_v16 = vcombine.low %v2400_v46, %v2408_v50  ;;  %v2410_v35 = vcombine.high %v2400_v46, %v2408_v50  ;;  %v2391_v28 = vcombine.high %v2383_v6, %v3015_v23  ;;  %v2392_v12 = vcombine.high %v2390_v7, %v3015_v23 }
 0x7fc   :  { %v2431_v57 = vshrl.u32 %v2383_v6, 16  ;;  %v2447_v34 = vshrl.u32 %v2390_v7, 16  ;;  %p2982_p13 = por %p2981_p12, %p2980_p11 }
 0x7fd   :  { %v2417_v9 = vrot.slane %v2409_v16, %v3182_v1  ;;  %v2424_v10 = vrot.slane %v2410_v35, %v3182_v1  ;;  %v2439_v54 = vshrl.u32 %v2391_v28, 16  ;;  %v2455_v22 = vshrl.u32 %v2392_v12, 16 }
 0x7fe   :  { %p2983_p0 = pnand %p2982_p13, %p2976_p10 }
 0x7ff   :  { %v2425_v36 = vcombine.high %v2417_v9, %v3015_v23  ;;  %v2426_v42 = vcombine.high %v2424_v10, %v3015_v23  ;;  %v2429_v53 = vpack.i.b16 %v2417_v9, %v2383_v6  ;;  %v2432_v17 = vshrl.u32 %v2417_v9, 16  ;;  %v2907_v9 = vld [vmem:[%s3685_s0] sm:$0xff] }
 0x800   :  { %v2445_v20 = vpack.i.b16 %v2424_v10, %v2390_v7  ;;  %v2448_v59 = vshrl.u32 %v2424_v10, 16  ;;  %v2908_v10 = vld [vmem:[%s3685_s0 + $0x8] sm:$0xff] }
 0x801   :  { %v2433_v49 = vpack.i.b16 %v2432_v17, %v2431_v57  ;;  %v2437_v56 = vpack.i.b16 %v2425_v36, %v2391_v28  ;;  %v2440_v47 = vshrl.u32 %v2425_v36, 16  ;;  %v2453_v51 = vpack.i.b16 %v2426_v42, %v2392_v12 }
 0x802   :  { %v2449_v18 = vpack.i.b16 %v2448_v59, %v2447_v34  ;;  %v2456_v0 = vshrl.u32 %v2426_v42, 16  ;;  %v2459_v3 = vcombine.low %v2429_v53, %v2445_v20 }
 0x803   :  { %v2441_v58 = vpack.i.b16 %v2440_v47, %v2439_v54  ;;  %v2467_v60 = vcombine.low %v2437_v56, %v2453_v51 }
 0x804   :  { %v2457_v31 = vpack.i.b16 %v2456_v0, %v2455_v22  ;;  %v2484_v63 = vcombine.low %v2433_v49, %v2449_v18  ;;  %v2466_v52 = vrot.slane %v2459_v3, %v3176_v48 }
 0x805   :  { %v2474_v39 = vrot.slane %v2467_v60, %v3176_v48 }
 0x806   :  { %v2492_v55 = vcombine.low %v2441_v58, %v2457_v31  ;;  %v2491_v14 = vrot.slane %v2484_v63, %v3176_v48 }
 0x807   :  { %v2475_v13 = vcombine.low %v2466_v52, %v2474_v39 }
 0x808   :  { %v2499_v15 = vrot.slane %v2492_v55, %v3176_v48 }
 0x809   :  { %v2482_v11 = vrot.slane %v2475_v13, %v3182_v1 }
 0x80a   :  { %v2500_v8 = vcombine.low %v2491_v14, %v2499_v15 }
 0x80b   :  { %v2483_v40 = vcombine.high %v2482_v11, %v3015_v23  ;;  %v2512_v30 = vshrl.u32 %v2482_v11, 16 }
 0x80c   :  { %v2507_v29 = vrot.slane %v2500_v8, %v3182_v1  ;;  %v1426_v1 = vpop.permute.xlu1 %1425 }
 0x80d   :  { %v2518_v45 = vshrl.u32 %v2483_v40, 16  ;;  %v1433_v7 = vsel %vm844_vm2, %v1415_v19, %v1426_v1 }
 0x80e   :  { %v2513_v48 = vshrl.u32 %v2507_v29, 16  ;;  %v2508_v33 = vcombine.high %v2507_v29, %v3015_v23  ;;  %v2511_v37 = vpack.i.b16 %v2507_v29, %v2482_v11 }
 0x810   :  { %v2514_v38 = vpack.i.b16 %v2513_v48, %v2512_v30  ;;  %v2517_v41 = vpack.i.b16 %v2508_v33, %v2483_v40  ;;  %v2519_v43 = vshrl.u32 %v2508_v33, 16 }
 0x812   :  { %2521 = vrot.lane.b32.xlu1 %v2514_v38, %s3016_s3  ;;  %2523 = vrot.lane.b32.xlu0 %v2517_v41, %s3017_s6  ;;  %v2520_v5 = vpack.i.b16 %v2519_v43, %v2518_v45 }
 0x816   :  { %2525 = vrot.lane.b32.xlu1 %v2520_v5, %s3018_s25  ;;  %1429 = vrot.lane.b32.xlu0 %v3591_v25, %s3018_s25 }
 0x81a   :  { %1427 = vrot.lane.b32.xlu1 %v1421_v24, %s3017_s6 }
 0x884   :  { %v2522_v23 = vpop.permute.xlu1 %2521  ;;  %v2524_v46 = vpop.permute.xlu0 %2523 }
 0x885   :  { %v2529_v44 = vsel %vm844_vm2, %v2511_v37, %v2522_v23 }
 0x886   :  { %v2531_v62 = vsel %vm104_vm0, %v2529_v44, %v2524_v46 }
 0x888   :  { %v2526_v50 = vpop.permute.xlu1 %2525  ;;  %v1430_v35 = vpop.permute.xlu0 %1429 }
 0x889   :  { %v2533_v6 = vsel %vm1436_vm5, %v2531_v62, %v2526_v50 }
 0x88a   :  { %v2535_v16 = vrot.slane %v2533_v6, 4 }
 0x88c   :  { %v1428_v25 = vpop.permute.xlu1 %1427 }
 0x88d   :  { %v1435_v27 = vsel %vm104_vm0, %v1433_v7, %v1428_v25 }
 0x88e   :  { %v1438_v4 = vsel %vm1436_vm5, %v1435_v27, %v1430_v35 }
 0x88f   :  { %v2537_v24 = vsel %vm1081_vm4, %v1438_v4, %v2535_v16 }
 0x890   :  { %2837 = vmatmul.mubr.msk.bf16.vlgmr.msra.gmra.mrb[36].mxu1 %vm2562_vm6, %v2537_v24 }
 0x963   :  { %v2599_v28 = vpop.f32.mrb[36].mxu1 }
 0x964   :  { %v2600_v21 = vadd.f32 %v2907_v9, %v2599_v28  ;;  %v2838_v61 = vpop.f32.mrb[37].mxu1 }
 0x965   :  { %v2602_v19 = vpop.f32.mrb[38].mxu1 }
 0x966   :  { %2606 = vst.msk [vmem:[#allocation8] sm:$0xff] %vm104_vm0, %v2600_v21  ;;  %v2603_v12 = vadd.f32 %v2908_v10, %v2602_v19  ;;  %v2839_v57 = vpop.f32.mrb[39].mxu1 }
 0x968   :  { %2607 = vst.msk [vmem:[#allocation8 + $0x8] sm:$0xff] %vm104_vm0, %v2603_v12 }
 0x969   :  { %2986 = shalt.err (!%p2983_p0)
}
 0x96a   :  { %s2987_s21 = scalar_lea.hbm %s3695_s10, 256 }
 0x96b   :  { %p2988_p1 = scmp.ne.s32.totalorder %s3695_s10, %s2987_s21  ;;  %p2991_p2 = scmp.lt.u32.totalorder %s2987_s21, %s3695_s10 }
 0x96d   :  { %p2993_p3 = pnand %p2991_p2, %p2988_p1 }
 0x96f   :  { %2996 = shalt.err (!%p2993_p3)
}
 0x970   :  { %s3020_s24 = smov 128   ;;  %s3021_s8 = smov 8  }
 0x971   :  { %2619 = dma.vmem_to_hbm [thread:$0]  %s2614_s26, 256, %s3695_s10, [#allocation4], %s3020_s24, %s3020_s24, %s3021_s8  }
 0x972   :  { %3001 = dma.done.wait [#allocation4], 256  }
 0x973   :  { %3002 = vsyncadd [#allocation4], 4294967040 }
 0x974   :  { %2623 = vsyncpa [#allocation3], 1 }
 0x975   :  { %2624 = vsyncpa [#allocation6], 1 }
 0x976   :  { %2625 = vsyncpa [#allocation4], 1 }

</bundles_post_ra>
